<compile_context>
chip_gen: v7x
topology: tpu7x:2x2x1
jax: 0.10.0
libtpu: 0.0.40
codegen_flags: <defaults>
</compile_context>

<pallas_src>
import functools

import jax
import jax.numpy as jnp
import numpy as np
from jax.experimental import pallas as pl
from jax.experimental.pallas import tpu as pltpu


# ------------------------------- fused kernel ------------------------------ #

def _garment_kernel(x_ref, w1_ref, b1_ref, w2_ref, b2_ref,
                    fw1_ref, fb1_ref, fw2_ref, fb2_ref, fw3_ref, fb3_ref,
                    o_ref):
    """LeNet forward for one batch tile of TB images.

    Layouts (all f32):
      x_ref  : (28, TB, 28)   input, [H, batch, W]   (H leading, W on lanes)
      w1_ref : (5, 28, 256)   conv1 banded weights, one band per kernel row
      b1_ref : (1, 256)
      w2_ref : (5, 128, 256)  conv2 banded weights
      b2_ref : (1, 256)
      fw1_ref: (512, 120)     fc1 weights (pool2 layout + torch flatten baked in)
      fb1_ref: (1, 120)
      fw2_ref: (120, 84)   fb2_ref: (1, 84)
      fw3_ref: (84, 128)   fb3_ref: (1, 128)   (zero-padded 10 -> 128 outputs)
      o_ref  : (TB, 128)      logits in lanes [0,10), zeros elsewhere

    Conv output lane layout (so pool-W is a 128-aligned lane-slice max):
      conv1: lane = (w % 2)*128 + (w // 2)*6  + c   (w in [0,24), c in [0,6))
      conv2: lane = (w % 2)*128 + (w // 2)*16 + c   (w in [0,8),  c in [0,16))
    """
    f32 = jnp.float32
    tb = x_ref.shape[1]
    x = x_ref[...]                                        # (28, TB, 28)

    # ---- conv1 (1 -> 6, 5x5, valid): 5 banded MXU matmuls + bias + ReLU ---- #
    acc1 = jnp.dot(x[0:24].reshape(24 * tb, 28), w1_ref[0],
                   preferred_element_type=f32)            # (24*TB, 256)
    for di in range(1, 5):
        lhs = x[di:di + 24].reshape(24 * tb, 28)          # leading-dim shift
        acc1 = acc1 + jnp.dot(lhs, w1_ref[di], preferred_element_type=f32)
    c1 = jnp.maximum(acc1 + b1_ref[...], 0.0)             # (24*TB, 256)

    # ---- maxpool 2x2, registers only --------------------------------------- #
    c1r = c1.reshape(12, 2, tb, 256)                      # split pooled-H pairs
    p1h = jnp.maximum(c1r[:, 0], c1r[:, 1])               # (12, TB, 256)
    p1 = jnp.maximum(p1h[:, :, :128], p1h[:, :, 128:])    # (12, TB, 128) even/odd W

    # ---- conv2 (6 -> 16, 5x5, valid): 5 banded MXU matmuls + bias + ReLU --- #
    acc2 = jnp.dot(p1[0:8].reshape(8 * tb, 128), w2_ref[0],
                   preferred_element_type=f32)            # (8*TB, 256)
    for di in range(1, 5):
        lhs = p1[di:di + 8].reshape(8 * tb, 128)
        acc2 = acc2 + jnp.dot(lhs, w2_ref[di], preferred_element_type=f32)
    c2 = jnp.maximum(acc2 + b2_ref[...], 0.0)             # (8*TB, 256)

    # ---- maxpool 2x2, registers only --------------------------------------- #
    c2r = c2.reshape(4, 2, tb, 256)
    p2h = jnp.maximum(c2r[:, 0], c2r[:, 1])               # (4, TB, 256)
    p2 = jnp.maximum(p2h[:, :, :128], p2h[:, :, 128:])    # (4, TB, 128)

    # ---- flatten (baked into fw1) + fc1/fc2/fc3 ----------------------------- #
    flat = jnp.concatenate([p2[0], p2[1], p2[2], p2[3]], axis=-1)  # (TB, 512)
    h1 = jnp.maximum(jnp.dot(flat, fw1_ref[...], preferred_element_type=f32)
                     + fb1_ref[...], 0.0)                 # (TB, 120)
    h2 = jnp.maximum(jnp.dot(h1, fw2_ref[...], preferred_element_type=f32)
                     + fb2_ref[...], 0.0)                 # (TB, 84)
    out = jnp.dot(h2, fw3_ref[...], preferred_element_type=f32) + fb3_ref[...]
    o_ref[...] = out.astype(o_ref.dtype)                  # (TB, 128), lane-dense


# ------------------------------ host wrappers ------------------------------ #

def _round_up(v, m):
    return ((v + m - 1) // m) * m


def _full_spec(shape):
    """Whole-array block with a constant index map -> VMEM-resident weights."""
    return pl.BlockSpec(shape, lambda i: (0,) * len(shape))


def _fused_forward(kp, x_hbw, tb):
    n_pad = x_hbw.shape[1]
    return pl.pallas_call(
        _garment_kernel,
        out_shape=jax.ShapeDtypeStruct((n_pad, 128), jnp.float32),
        grid=(n_pad // tb,),
        in_specs=[
            pl.BlockSpec((28, tb, 28), lambda i: (0, i, 0)),
            _full_spec((5, 28, 256)), _full_spec((1, 256)),
            _full_spec((5, 128, 256)), _full_spec((1, 256)),
            _full_spec((512, 120)), _full_spec((1, 120)),
            _full_spec((120, 84)), _full_spec((1, 84)),
            _full_spec((84, 128)), _full_spec((1, 128)),
        ],
        out_specs=pl.BlockSpec((tb, 128), lambda i: (i, 0)),
        compiler_params=pltpu.CompilerParams(
            dimension_semantics=("parallel",),
            vmem_limit_bytes=48 * 1024 * 1024),   # > v5e 16MiB default, < 64MiB v7x
    )(x_hbw, kp["w1band"], kp["b1row"], kp["w2band"], kp["b2row"],
      kp["fw1"], kp["fb1"], kp["fw2"], kp["fb2"], kp["fw3"], kp["fb3"])


@functools.partial(jax.jit, static_argnames=("tb",))
def garment_classifier(kparams, x_nchw, tb=None):
    """Forward pass matching the PyTorch GarmentClassifier exactly."""
    n = x_nchw.shape[0]
    x = x_nchw.astype(jnp.float32).reshape(n, 28, 28)     # C=1: NCHW == (N,H,W)
    if tb is None:
        tb = min(128, _round_up(max(n, 1), 8))
    tb = _round_up(tb, 8)
    n_pad = _round_up(n, tb)
    if n_pad != n:
        x = jnp.pad(x, ((0, n_pad - n), (0, 0), (0, 0)))
    x_hbw = jnp.transpose(x, (1, 0, 2))                    # (28, n_pad, 28)
    out = _fused_forward(kparams, x_hbw, tb)               # (n_pad, 128)
    return out[:n, :10]


def init_params(key):
    """Deterministic PyTorch-style uniform(-1/sqrt(fan_in), 1/sqrt(fan_in))."""
    def uni(k, shape, fan_in):
        bound = 1.0 / float(fan_in) ** 0.5
        return jax.random.uniform(k, shape, jnp.float32, -bound, bound)

    ks = jax.random.split(key, 10)
    return {
        "conv1_w": uni(ks[0], (6, 1, 5, 5), 1 * 5 * 5),
        "conv1_b": uni(ks[1], (6,), 1 * 5 * 5),
        "conv2_w": uni(ks[2], (16, 6, 5, 5), 6 * 5 * 5),
        "conv2_b": uni(ks[3], (16,), 6 * 5 * 5),
        "fc1_w": uni(ks[4], (16 * 4 * 4, 120), 16 * 4 * 4),
        "fc1_b": uni(ks[5], (120,), 16 * 4 * 4),
        "fc2_w": uni(ks[6], (120, 84), 120),
        "fc2_b": uni(ks[7], (84,), 120),
        "fc3_w": uni(ks[8], (84, 10), 84),
        "fc3_b": uni(ks[9], (10,), 84),
    }


def prepare_params(params):
    """One-time (host-side, numpy) re-layout of the weights into kernel form:
       banded conv matrices, tiled bias rows, a permuted+zero-padded fc1 matrix
       that absorbs the pooled layout and torch's view(-1,256) flatten, and a
       128-column zero-padded fc3 for a lane-dense output."""
    f32 = np.float32
    w1 = np.asarray(params["conv1_w"], f32)   # (6, 1, 5, 5)
    b1 = np.asarray(params["conv1_b"], f32)
    w2 = np.asarray(params["conv2_w"], f32)   # (16, 6, 5, 5)
    b2 = np.asarray(params["conv2_b"], f32)
    fw1 = np.asarray(params["fc1_w"], f32)    # (256, 120), torch row = c*16+h*4+w
    fb1 = np.asarray(params["fc1_b"], f32)
    fw2 = np.asarray(params["fc2_w"], f32)
    fb2 = np.asarray(params["fc2_b"], f32)
    fw3 = np.asarray(params["fc3_w"], f32)
    fb3 = np.asarray(params["fc3_b"], f32)

    # conv1 band: out lane = (w%2)*128 + (w//2)*6 + c, input col = w + dj.
    w1band = np.zeros((5, 28, 256), f32)
    b1row = np.zeros((1, 256), f32)
    for w in range(24):
        col = (w % 2) * 128 + (w // 2) * 6
        b1row[0, col:col + 6] = b1
        for di in range(5):
            for dj in range(5):
                w1band[di, w + dj, col:col + 6] = w1[:, 0, di, dj]

    # conv2 band: in lane = win*6 + ci (win in [0,12)),
    #             out lane = (wout%2)*128 + (wout//2)*16 + co.
    w2band = np.zeros((5, 128, 256), f32)
    b2row = np.zeros((1, 256), f32)
    for wout in range(8):
        col = (wout % 2) * 128 + (wout // 2) * 16
        b2row[0, col:col + 16] = b2
        for di in range(5):
            for dj in range(5):
                win = wout + dj
                w2band[di, win * 6:win * 6 + 6, col:col + 16] = w2[:, :, di, dj].T

    # fc1: flat lane = hp*128 + wp*16 + co  ->  torch feature co*16 + hp*4 + wp.
    fw1big = np.zeros((512, 120), f32)
    for hp in range(4):
        for wp in range(4):
            for co in range(16):
                fw1big[hp * 128 + wp * 16 + co, :] = fw1[co * 16 + hp * 4 + wp, :]

    fw3p = np.zeros((84, 128), f32)
    fw3p[:, :10] = fw3
    fb3p = np.zeros((1, 128), f32)
    fb3p[0, :10] = fb3

    return {
        "w1band": jnp.asarray(w1band), "b1row": jnp.asarray(b1row),
        "w2band": jnp.asarray(w2band), "b2row": jnp.asarray(b2row),
        "fw1": jnp.asarray(fw1big), "fb1": jnp.asarray(fb1.reshape(1, 120)),
        "fw2": jnp.asarray(fw2), "fb2": jnp.asarray(fb2.reshape(1, 84)),
        "fw3": jnp.asarray(fw3p), "fb3": jnp.asarray(fb3p),
    }


def reference_forward(params, x_nchw):
    """Pure-JAX (XLA) reference implementing the PyTorch module exactly."""
    x = x_nchw.astype(jnp.float32)
    y = jax.lax.conv_general_dilated(
        x, params["conv1_w"], (1, 1), "VALID",
        dimension_numbers=("NCHW", "OIHW", "NCHW"))
    y = jax.nn.relu(y + params["conv1_b"].reshape(1, 6, 1, 1))
    y = jax.lax.reduce_window(y, -jnp.inf, jax.lax.max,
                              (1, 1, 2, 2), (1, 1, 2, 2), "VALID")
    y = jax.lax.conv_general_dilated(
        y, params["conv2_w"], (1, 1), "VALID",
        dimension_numbers=("NCHW", "OIHW", "NCHW"))
    y = jax.nn.relu(y + params["conv2_b"].reshape(1, 16, 1, 1))
    y = jax.lax.reduce_window(y, -jnp.inf, jax.lax.max,
                              (1, 1, 2, 2), (1, 1, 2, 2), "VALID")
    y = y.reshape(y.shape[0], 16 * 4 * 4)
    y = jax.nn.relu(y @ params["fc1_w"] + params["fc1_b"])
    y = jax.nn.relu(y @ params["fc2_w"] + params["fc2_b"])
    return y @ params["fc3_w"] + params["fc3_b"]


if __name__ == "__main__":
    # Input shape is dictated by the module: 28x28 single-channel images
    # (fc1 expects 16*4*4 = 256 features after the two conv+pool stages).
    # Small demo: batch 16 with a batch tile of 8 -> grid = (2,).
    x = jax.random.normal(jax.random.PRNGKey(0), (16, 1, 28, 28), jnp.float32)

    params = init_params(jax.random.PRNGKey(42))
    kparams = prepare_params(params)          # one-time, outside the hot path

    logits = jax.block_until_ready(garment_classifier(kparams, x, tb=8))
    assert logits.shape == (16, 10) and logits.dtype == jnp.float32

    ref = jax.block_until_ready(reference_forward(params, x))
    assert jnp.allclose(logits, ref, rtol=2e-3, atol=2e-3), (
        "Pallas forward does not match the JAX reference")

    print("KERNEL_OK")
</pallas_src>

<mosaic_0001>
module attributes {stable_mosaic.version = 11 : i64} {
  func.func @_garment_kernel(%arg0: i32, %arg1: memref<28x8x28xf32, #tpu.memory_space<vmem>>, %arg2: memref<5x28x256xf32, #tpu.memory_space<vmem>>, %arg3: memref<1x256xf32, #tpu.memory_space<vmem>>, %arg4: memref<5x128x256xf32, #tpu.memory_space<vmem>>, %arg5: memref<1x256xf32, #tpu.memory_space<vmem>>, %arg6: memref<512x120xf32, #tpu.memory_space<vmem>>, %arg7: memref<1x120xf32, #tpu.memory_space<vmem>>, %arg8: memref<120x84xf32, #tpu.memory_space<vmem>>, %arg9: memref<1x84xf32, #tpu.memory_space<vmem>>, %arg10: memref<84x128xf32, #tpu.memory_space<vmem>>, %arg11: memref<1x128xf32, #tpu.memory_space<vmem>>, %arg12: memref<8x128xf32, #tpu.memory_space<vmem>>) attributes {dimension_semantics = [#tpu.dimension_semantics<parallel>], iteration_bounds = array<i64: 2>, scalar_prefetch = 0 : i64, scratch_operands = 0 : i64, tpu.core_type = #tpu.core_type<tc>, window_params = [{transform_indices = @transform_0, window_bounds = array<i64: 28, 8, 28>}, {pipeline_mode = #tpu.pipeline_mode<synchronous>, transform_indices = @transform_1, window_bounds = array<i64: 5, 28, 256>}, {pipeline_mode = #tpu.pipeline_mode<synchronous>, transform_indices = @transform_2, window_bounds = array<i64: 1, 256>}, {pipeline_mode = #tpu.pipeline_mode<synchronous>, transform_indices = @transform_3, window_bounds = array<i64: 5, 128, 256>}, {pipeline_mode = #tpu.pipeline_mode<synchronous>, transform_indices = @transform_4, window_bounds = array<i64: 1, 256>}, {pipeline_mode = #tpu.pipeline_mode<synchronous>, transform_indices = @transform_5, window_bounds = array<i64: 512, 120>}, {pipeline_mode = #tpu.pipeline_mode<synchronous>, transform_indices = @transform_6, window_bounds = array<i64: 1, 120>}, {pipeline_mode = #tpu.pipeline_mode<synchronous>, transform_indices = @transform_7, window_bounds = array<i64: 120, 84>}, {pipeline_mode = #tpu.pipeline_mode<synchronous>, transform_indices = @transform_8, window_bounds = array<i64: 1, 84>}, {pipeline_mode = #tpu.pipeline_mode<synchronous>, transform_indices = @transform_9, window_bounds = array<i64: 84, 128>}, {pipeline_mode = #tpu.pipeline_mode<synchronous>, transform_indices = @transform_10, window_bounds = array<i64: 1, 128>}, {transform_indices = @transform_11, window_bounds = array<i64: 8, 128>}]} {
    %c0 = arith.constant 0 : index
    %c0_0 = arith.constant 0 : index
    %c0_1 = arith.constant 0 : index
    %0 = vector.load %arg1[%c0, %c0_0, %c0_1] : memref<28x8x28xf32, #tpu.memory_space<vmem>>, vector<28x8x28xf32>
    %1 = vector.extract_strided_slice %0 {offsets = [0, 0, 0], sizes = [24, 8, 28], strides = [1, 1, 1]} : vector<28x8x28xf32> to vector<24x8x28xf32>
    %2 = vector.shape_cast %1 : vector<24x8x28xf32> to vector<192x28xf32>
    %c0_2 = arith.constant 0 : index
    %c0_3 = arith.constant 0 : index
    %c0_4 = arith.constant 0 : index
    %3 = vector.load %arg2[%c0_2, %c0_3, %c0_4] : memref<5x28x256xf32, #tpu.memory_space<vmem>>, vector<1x28x256xf32>
    %4 = vector.shape_cast %3 : vector<1x28x256xf32> to vector<28x256xf32>
    %cst = arith.constant dense<0.000000e+00> : vector<192x256xf32>
    %5 = tpu.matmul %2, %4, %cst {dimension_numbers = #tpu.dot_dimension_numbers<[1], [0], [0], [1], [0, 0, 1, 1], [], []>} : vector<192x28xf32>, vector<28x256xf32>, vector<192x256xf32> -> vector<192x256xf32>
    %6 = vector.extract_strided_slice %0 {offsets = [1, 0, 0], sizes = [24, 8, 28], strides = [1, 1, 1]} : vector<28x8x28xf32> to vector<24x8x28xf32>
    %7 = vector.shape_cast %6 : vector<24x8x28xf32> to vector<192x28xf32>
    %c1 = arith.constant 1 : index
    %c0_5 = arith.constant 0 : index
    %c0_6 = arith.constant 0 : index
    %8 = vector.load %arg2[%c1, %c0_5, %c0_6] : memref<5x28x256xf32, #tpu.memory_space<vmem>>, vector<1x28x256xf32>
    %9 = vector.shape_cast %8 : vector<1x28x256xf32> to vector<28x256xf32>
    %cst_7 = arith.constant dense<0.000000e+00> : vector<192x256xf32>
    %10 = tpu.matmul %7, %9, %cst_7 {dimension_numbers = #tpu.dot_dimension_numbers<[1], [0], [0], [1], [0, 0, 1, 1], [], []>} : vector<192x28xf32>, vector<28x256xf32>, vector<192x256xf32> -> vector<192x256xf32>
    %11 = arith.addf %5, %10 : vector<192x256xf32>
    %12 = vector.extract_strided_slice %0 {offsets = [2, 0, 0], sizes = [24, 8, 28], strides = [1, 1, 1]} : vector<28x8x28xf32> to vector<24x8x28xf32>
    %13 = vector.shape_cast %12 : vector<24x8x28xf32> to vector<192x28xf32>
    %c2 = arith.constant 2 : index
    %c0_8 = arith.constant 0 : index
    %c0_9 = arith.constant 0 : index
    %14 = vector.load %arg2[%c2, %c0_8, %c0_9] : memref<5x28x256xf32, #tpu.memory_space<vmem>>, vector<1x28x256xf32>
    %15 = vector.shape_cast %14 : vector<1x28x256xf32> to vector<28x256xf32>
    %cst_10 = arith.constant dense<0.000000e+00> : vector<192x256xf32>
    %16 = tpu.matmul %13, %15, %cst_10 {dimension_numbers = #tpu.dot_dimension_numbers<[1], [0], [0], [1], [0, 0, 1, 1], [], []>} : vector<192x28xf32>, vector<28x256xf32>, vector<192x256xf32> -> vector<192x256xf32>
    %17 = arith.addf %11, %16 : vector<192x256xf32>
    %18 = vector.extract_strided_slice %0 {offsets = [3, 0, 0], sizes = [24, 8, 28], strides = [1, 1, 1]} : vector<28x8x28xf32> to vector<24x8x28xf32>
    %19 = vector.shape_cast %18 : vector<24x8x28xf32> to vector<192x28xf32>
    %c3 = arith.constant 3 : index
    %c0_11 = arith.constant 0 : index
    %c0_12 = arith.constant 0 : index
    %20 = vector.load %arg2[%c3, %c0_11, %c0_12] : memref<5x28x256xf32, #tpu.memory_space<vmem>>, vector<1x28x256xf32>
    %21 = vector.shape_cast %20 : vector<1x28x256xf32> to vector<28x256xf32>
    %cst_13 = arith.constant dense<0.000000e+00> : vector<192x256xf32>
    %22 = tpu.matmul %19, %21, %cst_13 {dimension_numbers = #tpu.dot_dimension_numbers<[1], [0], [0], [1], [0, 0, 1, 1], [], []>} : vector<192x28xf32>, vector<28x256xf32>, vector<192x256xf32> -> vector<192x256xf32>
    %23 = arith.addf %17, %22 : vector<192x256xf32>
    %24 = vector.extract_strided_slice %0 {offsets = [4, 0, 0], sizes = [24, 8, 28], strides = [1, 1, 1]} : vector<28x8x28xf32> to vector<24x8x28xf32>
    %25 = vector.shape_cast %24 : vector<24x8x28xf32> to vector<192x28xf32>
    %c4 = arith.constant 4 : index
    %c0_14 = arith.constant 0 : index
    %c0_15 = arith.constant 0 : index
    %26 = vector.load %arg2[%c4, %c0_14, %c0_15] : memref<5x28x256xf32, #tpu.memory_space<vmem>>, vector<1x28x256xf32>
    %27 = vector.shape_cast %26 : vector<1x28x256xf32> to vector<28x256xf32>
    %cst_16 = arith.constant dense<0.000000e+00> : vector<192x256xf32>
    %28 = tpu.matmul %25, %27, %cst_16 {dimension_numbers = #tpu.dot_dimension_numbers<[1], [0], [0], [1], [0, 0, 1, 1], [], []>} : vector<192x28xf32>, vector<28x256xf32>, vector<192x256xf32> -> vector<192x256xf32>
    %29 = arith.addf %23, %28 : vector<192x256xf32>
    %c0_17 = arith.constant 0 : index
    %c0_18 = arith.constant 0 : index
    %30 = vector.load %arg3[%c0_17, %c0_18] : memref<1x256xf32, #tpu.memory_space<vmem>>, vector<1x256xf32>
    %31 = vector.broadcast %30 : vector<1x256xf32> to vector<192x256xf32>
    %32 = arith.addf %29, %31 : vector<192x256xf32>
    %cst_19 = arith.constant 0.000000e+00 : f32
    %33 = vector.broadcast %cst_19 : f32 to vector<192x256xf32>
    %34 = arith.maximumf %32, %33 : vector<192x256xf32>
    %35 = vector.shape_cast %34 : vector<192x256xf32> to vector<12x2x8x256xf32>
    %36 = vector.extract_strided_slice %35 {offsets = [0, 0, 0, 0], sizes = [12, 1, 8, 256], strides = [1, 1, 1, 1]} : vector<12x2x8x256xf32> to vector<12x1x8x256xf32>
    %37 = vector.shape_cast %36 : vector<12x1x8x256xf32> to vector<12x8x256xf32>
    %38 = vector.extract_strided_slice %35 {offsets = [0, 1, 0, 0], sizes = [12, 1, 8, 256], strides = [1, 1, 1, 1]} : vector<12x2x8x256xf32> to vector<12x1x8x256xf32>
    %39 = vector.shape_cast %38 : vector<12x1x8x256xf32> to vector<12x8x256xf32>
    %40 = arith.maximumf %37, %39 : vector<12x8x256xf32>
    %41 = vector.extract_strided_slice %40 {offsets = [0, 0, 0], sizes = [12, 8, 128], strides = [1, 1, 1]} : vector<12x8x256xf32> to vector<12x8x128xf32>
    %42 = vector.extract_strided_slice %40 {offsets = [0, 0, 128], sizes = [12, 8, 128], strides = [1, 1, 1]} : vector<12x8x256xf32> to vector<12x8x128xf32>
    %43 = arith.maximumf %41, %42 : vector<12x8x128xf32>
    %44 = vector.extract_strided_slice %43 {offsets = [0, 0, 0], sizes = [8, 8, 128], strides = [1, 1, 1]} : vector<12x8x128xf32> to vector<8x8x128xf32>
    %45 = vector.shape_cast %44 : vector<8x8x128xf32> to vector<64x128xf32>
    %c0_20 = arith.constant 0 : index
    %c0_21 = arith.constant 0 : index
    %c0_22 = arith.constant 0 : index
    %46 = vector.load %arg4[%c0_20, %c0_21, %c0_22] : memref<5x128x256xf32, #tpu.memory_space<vmem>>, vector<1x128x256xf32>
    %47 = vector.shape_cast %46 : vector<1x128x256xf32> to vector<128x256xf32>
    %cst_23 = arith.constant dense<0.000000e+00> : vector<64x256xf32>
    %48 = tpu.matmul %45, %47, %cst_23 {dimension_numbers = #tpu.dot_dimension_numbers<[1], [0], [0], [1], [0, 0, 1, 1], [], []>} : vector<64x128xf32>, vector<128x256xf32>, vector<64x256xf32> -> vector<64x256xf32>
    %49 = vector.extract_strided_slice %43 {offsets = [1, 0, 0], sizes = [8, 8, 128], strides = [1, 1, 1]} : vector<12x8x128xf32> to vector<8x8x128xf32>
    %50 = vector.shape_cast %49 : vector<8x8x128xf32> to vector<64x128xf32>
    %c1_24 = arith.constant 1 : index
    %c0_25 = arith.constant 0 : index
    %c0_26 = arith.constant 0 : index
    %51 = vector.load %arg4[%c1_24, %c0_25, %c0_26] : memref<5x128x256xf32, #tpu.memory_space<vmem>>, vector<1x128x256xf32>
    %52 = vector.shape_cast %51 : vector<1x128x256xf32> to vector<128x256xf32>
    %cst_27 = arith.constant dense<0.000000e+00> : vector<64x256xf32>
    %53 = tpu.matmul %50, %52, %cst_27 {dimension_numbers = #tpu.dot_dimension_numbers<[1], [0], [0], [1], [0, 0, 1, 1], [], []>} : vector<64x128xf32>, vector<128x256xf32>, vector<64x256xf32> -> vector<64x256xf32>
    %54 = arith.addf %48, %53 : vector<64x256xf32>
    %55 = vector.extract_strided_slice %43 {offsets = [2, 0, 0], sizes = [8, 8, 128], strides = [1, 1, 1]} : vector<12x8x128xf32> to vector<8x8x128xf32>
    %56 = vector.shape_cast %55 : vector<8x8x128xf32> to vector<64x128xf32>
    %c2_28 = arith.constant 2 : index
    %c0_29 = arith.constant 0 : index
    %c0_30 = arith.constant 0 : index
    %57 = vector.load %arg4[%c2_28, %c0_29, %c0_30] : memref<5x128x256xf32, #tpu.memory_space<vmem>>, vector<1x128x256xf32>
    %58 = vector.shape_cast %57 : vector<1x128x256xf32> to vector<128x256xf32>
    %cst_31 = arith.constant dense<0.000000e+00> : vector<64x256xf32>
    %59 = tpu.matmul %56, %58, %cst_31 {dimension_numbers = #tpu.dot_dimension_numbers<[1], [0], [0], [1], [0, 0, 1, 1], [], []>} : vector<64x128xf32>, vector<128x256xf32>, vector<64x256xf32> -> vector<64x256xf32>
    %60 = arith.addf %54, %59 : vector<64x256xf32>
    %61 = vector.extract_strided_slice %43 {offsets = [3, 0, 0], sizes = [8, 8, 128], strides = [1, 1, 1]} : vector<12x8x128xf32> to vector<8x8x128xf32>
    %62 = vector.shape_cast %61 : vector<8x8x128xf32> to vector<64x128xf32>
    %c3_32 = arith.constant 3 : index
    %c0_33 = arith.constant 0 : index
    %c0_34 = arith.constant 0 : index
    %63 = vector.load %arg4[%c3_32, %c0_33, %c0_34] : memref<5x128x256xf32, #tpu.memory_space<vmem>>, vector<1x128x256xf32>
    %64 = vector.shape_cast %63 : vector<1x128x256xf32> to vector<128x256xf32>
    %cst_35 = arith.constant dense<0.000000e+00> : vector<64x256xf32>
    %65 = tpu.matmul %62, %64, %cst_35 {dimension_numbers = #tpu.dot_dimension_numbers<[1], [0], [0], [1], [0, 0, 1, 1], [], []>} : vector<64x128xf32>, vector<128x256xf32>, vector<64x256xf32> -> vector<64x256xf32>
    %66 = arith.addf %60, %65 : vector<64x256xf32>
    %67 = vector.extract_strided_slice %43 {offsets = [4, 0, 0], sizes = [8, 8, 128], strides = [1, 1, 1]} : vector<12x8x128xf32> to vector<8x8x128xf32>
    %68 = vector.shape_cast %67 : vector<8x8x128xf32> to vector<64x128xf32>
    %c4_36 = arith.constant 4 : index
    %c0_37 = arith.constant 0 : index
    %c0_38 = arith.constant 0 : index
    %69 = vector.load %arg4[%c4_36, %c0_37, %c0_38] : memref<5x128x256xf32, #tpu.memory_space<vmem>>, vector<1x128x256xf32>
    %70 = vector.shape_cast %69 : vector<1x128x256xf32> to vector<128x256xf32>
    %cst_39 = arith.constant dense<0.000000e+00> : vector<64x256xf32>
    %71 = tpu.matmul %68, %70, %cst_39 {dimension_numbers = #tpu.dot_dimension_numbers<[1], [0], [0], [1], [0, 0, 1, 1], [], []>} : vector<64x128xf32>, vector<128x256xf32>, vector<64x256xf32> -> vector<64x256xf32>
    %72 = arith.addf %66, %71 : vector<64x256xf32>
    %c0_40 = arith.constant 0 : index
    %c0_41 = arith.constant 0 : index
    %73 = vector.load %arg5[%c0_40, %c0_41] : memref<1x256xf32, #tpu.memory_space<vmem>>, vector<1x256xf32>
    %74 = vector.broadcast %73 : vector<1x256xf32> to vector<64x256xf32>
    %75 = arith.addf %72, %74 : vector<64x256xf32>
    %cst_42 = arith.constant 0.000000e+00 : f32
    %76 = vector.broadcast %cst_42 : f32 to vector<64x256xf32>
    %77 = arith.maximumf %75, %76 : vector<64x256xf32>
    %78 = vector.shape_cast %77 : vector<64x256xf32> to vector<4x2x8x256xf32>
    %79 = vector.extract_strided_slice %78 {offsets = [0, 0, 0, 0], sizes = [4, 1, 8, 256], strides = [1, 1, 1, 1]} : vector<4x2x8x256xf32> to vector<4x1x8x256xf32>
    %80 = vector.shape_cast %79 : vector<4x1x8x256xf32> to vector<4x8x256xf32>
    %81 = vector.extract_strided_slice %78 {offsets = [0, 1, 0, 0], sizes = [4, 1, 8, 256], strides = [1, 1, 1, 1]} : vector<4x2x8x256xf32> to vector<4x1x8x256xf32>
    %82 = vector.shape_cast %81 : vector<4x1x8x256xf32> to vector<4x8x256xf32>
    %83 = arith.maximumf %80, %82 : vector<4x8x256xf32>
    %84 = vector.extract_strided_slice %83 {offsets = [0, 0, 0], sizes = [4, 8, 128], strides = [1, 1, 1]} : vector<4x8x256xf32> to vector<4x8x128xf32>
    %85 = vector.extract_strided_slice %83 {offsets = [0, 0, 128], sizes = [4, 8, 128], strides = [1, 1, 1]} : vector<4x8x256xf32> to vector<4x8x128xf32>
    %86 = arith.maximumf %84, %85 : vector<4x8x128xf32>
    %87 = vector.extract_strided_slice %86 {offsets = [0, 0, 0], sizes = [1, 8, 128], strides = [1, 1, 1]} : vector<4x8x128xf32> to vector<1x8x128xf32>
    %88 = vector.shape_cast %87 : vector<1x8x128xf32> to vector<8x128xf32>
    %89 = vector.extract_strided_slice %86 {offsets = [1, 0, 0], sizes = [1, 8, 128], strides = [1, 1, 1]} : vector<4x8x128xf32> to vector<1x8x128xf32>
    %90 = vector.shape_cast %89 : vector<1x8x128xf32> to vector<8x128xf32>
    %91 = vector.extract_strided_slice %86 {offsets = [2, 0, 0], sizes = [1, 8, 128], strides = [1, 1, 1]} : vector<4x8x128xf32> to vector<1x8x128xf32>
    %92 = vector.shape_cast %91 : vector<1x8x128xf32> to vector<8x128xf32>
    %93 = vector.extract_strided_slice %86 {offsets = [3, 0, 0], sizes = [1, 8, 128], strides = [1, 1, 1]} : vector<4x8x128xf32> to vector<1x8x128xf32>
    %94 = vector.shape_cast %93 : vector<1x8x128xf32> to vector<8x128xf32>
    %95 = tpu.concatenate %88, %90, %92, %94 in 1 : vector<8x128xf32>, vector<8x128xf32>, vector<8x128xf32>, vector<8x128xf32> -> vector<8x512xf32>
    %c0_43 = arith.constant 0 : index
    %c0_44 = arith.constant 0 : index
    %96 = vector.load %arg6[%c0_43, %c0_44] : memref<512x120xf32, #tpu.memory_space<vmem>>, vector<512x120xf32>
    %cst_45 = arith.constant dense<0.000000e+00> : vector<8x120xf32>
    %97 = tpu.matmul %95, %96, %cst_45 {dimension_numbers = #tpu.dot_dimension_numbers<[1], [0], [0], [1], [0, 0, 1, 1], [], []>} : vector<8x512xf32>, vector<512x120xf32>, vector<8x120xf32> -> vector<8x120xf32>
    %c0_46 = arith.constant 0 : index
    %c0_47 = arith.constant 0 : index
    %98 = vector.load %arg7[%c0_46, %c0_47] : memref<1x120xf32, #tpu.memory_space<vmem>>, vector<1x120xf32>
    %99 = vector.broadcast %98 : vector<1x120xf32> to vector<8x120xf32>
    %100 = arith.addf %97, %99 : vector<8x120xf32>
    %cst_48 = arith.constant 0.000000e+00 : f32
    %101 = vector.broadcast %cst_48 : f32 to vector<8x120xf32>
    %102 = arith.maximumf %100, %101 : vector<8x120xf32>
    %c0_49 = arith.constant 0 : index
    %c0_50 = arith.constant 0 : index
    %103 = vector.load %arg8[%c0_49, %c0_50] : memref<120x84xf32, #tpu.memory_space<vmem>>, vector<120x84xf32>
    %cst_51 = arith.constant dense<0.000000e+00> : vector<8x84xf32>
    %104 = tpu.matmul %102, %103, %cst_51 {dimension_numbers = #tpu.dot_dimension_numbers<[1], [0], [0], [1], [0, 0, 1, 1], [], []>} : vector<8x120xf32>, vector<120x84xf32>, vector<8x84xf32> -> vector<8x84xf32>
    %c0_52 = arith.constant 0 : index
    %c0_53 = arith.constant 0 : index
    %105 = vector.load %arg9[%c0_52, %c0_53] : memref<1x84xf32, #tpu.memory_space<vmem>>, vector<1x84xf32>
    %106 = vector.broadcast %105 : vector<1x84xf32> to vector<8x84xf32>
    %107 = arith.addf %104, %106 : vector<8x84xf32>
    %cst_54 = arith.constant 0.000000e+00 : f32
    %108 = vector.broadcast %cst_54 : f32 to vector<8x84xf32>
    %109 = arith.maximumf %107, %108 : vector<8x84xf32>
    %c0_55 = arith.constant 0 : index
    %c0_56 = arith.constant 0 : index
    %110 = vector.load %arg10[%c0_55, %c0_56] : memref<84x128xf32, #tpu.memory_space<vmem>>, vector<84x128xf32>
    %cst_57 = arith.constant dense<0.000000e+00> : vector<8x128xf32>
    %111 = tpu.matmul %109, %110, %cst_57 {dimension_numbers = #tpu.dot_dimension_numbers<[1], [0], [0], [1], [0, 0, 1, 1], [], []>} : vector<8x84xf32>, vector<84x128xf32>, vector<8x128xf32> -> vector<8x128xf32>
    %c0_58 = arith.constant 0 : index
    %c0_59 = arith.constant 0 : index
    %112 = vector.load %arg11[%c0_58, %c0_59] : memref<1x128xf32, #tpu.memory_space<vmem>>, vector<1x128xf32>
    %113 = vector.broadcast %112 : vector<1x128xf32> to vector<8x128xf32>
    %114 = arith.addf %111, %113 : vector<8x128xf32>
    %c0_60 = arith.constant 0 : index
    %c0_61 = arith.constant 0 : index
    %115 = vector.load %arg12[%c0_60, %c0_61] : memref<8x128xf32, #tpu.memory_space<vmem>>, vector<8x128xf32>
    tpu.vector_store %arg12[%c0_60, %c0_61], %114 {strides = array<i32>} : memref<8x128xf32, #tpu.memory_space<vmem>>, vector<8x128xf32>,
    return
  }
  func.func @transform_0(%arg0: i32) -> (i32, i32, i32) {
    %c0_i32 = arith.constant 0 : i32
    %c0_i32_0 = arith.constant 0 : i32
    %c0_i32_1 = arith.constant 0 : i32
    return %c0_i32, %arg0, %c0_i32_0 : i32, i32, i32
  }
  func.func @transform_1(%arg0: i32) -> (i32, i32, i32) {
    %c0_i32 = arith.constant 0 : i32
    %c0_i32_0 = arith.constant 0 : i32
    %c0_i32_1 = arith.constant 0 : i32
    %c0_i32_2 = arith.constant 0 : i32
    return %c0_i32, %c0_i32_0, %c0_i32_1 : i32, i32, i32
  }
  func.func @transform_2(%arg0: i32) -> (i32, i32) {
    %c0_i32 = arith.constant 0 : i32
    %c0_i32_0 = arith.constant 0 : i32
    %c0_i32_1 = arith.constant 0 : i32
    return %c0_i32, %c0_i32_0 : i32, i32
  }
  func.func @transform_3(%arg0: i32) -> (i32, i32, i32) {
    %c0_i32 = arith.constant 0 : i32
    %c0_i32_0 = arith.constant 0 : i32
    %c0_i32_1 = arith.constant 0 : i32
    %c0_i32_2 = arith.constant 0 : i32
    return %c0_i32, %c0_i32_0, %c0_i32_1 : i32, i32, i32
  }
  func.func @transform_4(%arg0: i32) -> (i32, i32) {
    %c0_i32 = arith.constant 0 : i32
    %c0_i32_0 = arith.constant 0 : i32
    %c0_i32_1 = arith.constant 0 : i32
    return %c0_i32, %c0_i32_0 : i32, i32
  }
  func.func @transform_5(%arg0: i32) -> (i32, i32) {
    %c0_i32 = arith.constant 0 : i32
    %c0_i32_0 = arith.constant 0 : i32
    %c0_i32_1 = arith.constant 0 : i32
    return %c0_i32, %c0_i32_0 : i32, i32
  }
  func.func @transform_6(%arg0: i32) -> (i32, i32) {
    %c0_i32 = arith.constant 0 : i32
    %c0_i32_0 = arith.constant 0 : i32
    %c0_i32_1 = arith.constant 0 : i32
    return %c0_i32, %c0_i32_0 : i32, i32
  }
  func.func @transform_7(%arg0: i32) -> (i32, i32) {
    %c0_i32 = arith.constant 0 : i32
    %c0_i32_0 = arith.constant 0 : i32
    %c0_i32_1 = arith.constant 0 : i32
    return %c0_i32, %c0_i32_0 : i32, i32
  }
  func.func @transform_8(%arg0: i32) -> (i32, i32) {
    %c0_i32 = arith.constant 0 : i32
    %c0_i32_0 = arith.constant 0 : i32
    %c0_i32_1 = arith.constant 0 : i32
    return %c0_i32, %c0_i32_0 : i32, i32
  }
  func.func @transform_9(%arg0: i32) -> (i32, i32) {
    %c0_i32 = arith.constant 0 : i32
    %c0_i32_0 = arith.constant 0 : i32
    %c0_i32_1 = arith.constant 0 : i32
    return %c0_i32, %c0_i32_0 : i32, i32
  }
  func.func @transform_10(%arg0: i32) -> (i32, i32) {
    %c0_i32 = arith.constant 0 : i32
    %c0_i32_0 = arith.constant 0 : i32
    %c0_i32_1 = arith.constant 0 : i32
    return %c0_i32, %c0_i32_0 : i32, i32
  }
  func.func @transform_11(%arg0: i32) -> (i32, i32) {
    %c0_i32 = arith.constant 0 : i32
    %c0_i32_0 = arith.constant 0 : i32
    return %arg0, %c0_i32 : i32, i32
  }
}

</mosaic_0001>

<bundles_post_ra>
// kernel: garment_classifier.1
= control target key start
LH: loop header
LB: loop body
LE: loop exit
PB: predicated region body
PF: predicated region fallthrough
CT: control target
= control target key end

     0   :  { %s6449_s0 = inlined_call_operand.vmem [shape: f32[28,16,28], index: 0, kind: input, shape index: {}]   ;;  %s6450_s1 = inlined_call_operand.vmem [shape: f32[5,28,256], index: 1, kind: input, shape index: {}]   ;;  %s6451_s2 = inlined_call_operand.vmem [shape: f32[1,256], index: 2, kind: input, shape index: {}]   ;;  %s6452_s3 = inlined_call_operand.vmem [shape: f32[5,128,256], index: 3, kind: input, shape index: {}]   ;;  %s6453_s4 = inlined_call_operand.vmem [shape: f32[1,256], index: 4, kind: input, shape index: {}]   ;;  %s6454_s5 = inlined_call_operand.vmem [shape: f32[512,120], index: 5, kind: input, shape index: {}]   ;;  %s6455_s6 = inlined_call_operand.vmem [shape: f32[1,120], index: 6, kind: input, shape index: {}]   ;;  %s6456_s7 = inlined_call_operand.vmem [shape: f32[120,84], index: 7, kind: input, shape index: {}]   ;;  %s6457_s8 = inlined_call_operand.vmem [shape: f32[1,84], index: 8, kind: input, shape index: {}]   ;;  %s6458_s9 = inlined_call_operand.vmem [shape: f32[84,128], index: 9, kind: input, shape index: {}]   ;;  %s6459_s10 = inlined_call_operand.vmem [shape: f32[1,128], index: 10, kind: input, shape index: {}]   ;;  %s6460_s11 = inlined_call_operand.hbm [shape: f32[16,128], index: 11, kind: output, shape index: {}]  }
   0x1   :  { %6468 = sst [smem:[#allocation8_spill]] %s6449_s0 }
   0x2   :  { %16 = vsyncpa [#allocation4], 0 }
   0x3   :  { %18 = vsyncpa [#allocation4 + $0x1], 0  ;;  %s4567_s17 = smov 0   ;;  %s4569_s18 = smov 0  }
   0x4   :  { %s4571_s19 = smov 0   ;;  %s4573_s20 = smov 0  }
   0x5 LB: > { %s6461_s21 = sadd.s32 4294967295, %s4500_s20   ;;  %s3365_s22 = sadd.s32 4294967294, %s4500_s20   ;;  %s4500_s20 = sphi %s4573_s20, %s6485_s20   ;;  %s4496_s19 = sphi %s4571_s19, %s6484_s19   ;;  %s4492_s18 = sphi %s4569_s18, %s6483_s18   ;;  %s4488_s17 = sphi %s4567_s17, %s6482_s17  }
   0x6   : > { %s4590_s23 = sadd.s32 1, %s4500_s20   ;;  %s31_s24 = sadd.s32 1, %s4496_s19 }
   0x7   : > { %s28_s25 = ssub.s32 %s4500_s20, %s4590_s23  ;;  %p38_p0 = scmp.ne.s32.totalorder %s4496_s19, %s4492_s18 }
   0x8   : > { %p29_p1 = scmp.eq.s32.totalorder %s28_s25, 0  ;;  %p39_p2 = scmp.eq.s32.totalorder %s4500_s20, 0 }
   0x9   : > { %p278_p3 = scmp.eq.s32.totalorder %s6461_s21, 1  ;;  %p283_p4 = scmp.ne.s32.totalorder %s4492_s18, %s4488_s17 }
   0xa   : > { %s4603_s26 = scalar_select %p29_p1, %s4496_s19, %s31_s24  }
   0xb   : > { %p40_p5 = por %p39_p2, %p38_p0  ;;  %p4605_p6 = por %p278_p3, %p38_p0 }
   0xc   : > { %p284_p7 = scmp.eq.s32.totalorder %s3365_s22, 1  ;;  %p3367_p9 = scmp.ge.s32.totalorder %s4500_s20, 2 }
   0xe   : > { %p4609_p8 = por %p284_p7, %p283_p4  ;;  %330 = sbr.rel (%p3367_p9) target bundleno = 45 (0x2d), region = 56 }
  0x15   : > { %333 = sbr.rel (!%p40_p5) target bundleno = 45 (0x2d), region = 60  ;;  %s335_s29 = sand.u32 (%p40_p5), 1, %s4496_s19  }
  0x16   : > { %s3368_s30 = sshll.u32 (%p40_p5), %s4500_s20, 3  ;;  %s4393_s12 = smul.u32 (%p40_p5), 224, %s335_s29 }
  0x17   : > { %s6471_s0 = sld [smem:[#allocation8_spill]] (%p40_p5) }
  0x18   : > { %s4629_s16 = scalar_lea.vmem (%p40_p5), [#allocation2], %s4393_s12 }
  0x1d   : > { %s4621_s15 = scalar_lea.vmem %s6471_s0, %s3368_s30 }
  0x1e   : > { %v421_v0 = vld [vmem:[%s4621_s15] sm:$0xff]  ;;  %v423_v1 = vld [vmem:[%s4621_s15 + $0x10] sm:$0xff] }
  0x1f   : > { %v425_v2 = vld [vmem:[%s4621_s15 + $0x20] sm:$0xff]  ;;  %v427_v3 = vld [vmem:[%s4621_s15 + $0x30] sm:$0xff]  ;;  %422 = vst [vmem:[%s4629_s16] sm:$0xff] %v421_v0  ;;  %424 = vst [vmem:[%s4629_s16 + $0x8] sm:$0xff] %v423_v1 }
  0x20   : > { %v429_v4 = vld [vmem:[%s4621_s15 + $0x40] sm:$0xff]  ;;  %v431_v5 = vld [vmem:[%s4621_s15 + $0x50] sm:$0xff]  ;;  %426 = vst [vmem:[%s4629_s16 + $0x10] sm:$0xff] %v425_v2  ;;  %428 = vst [vmem:[%s4629_s16 + $0x18] sm:$0xff] %v427_v3 }
  0x21   : > { %430 = vst [vmem:[%s4629_s16 + $0x20] sm:$0xff] %v429_v4  ;;  %432 = vst [vmem:[%s4629_s16 + $0x28] sm:$0xff] %v431_v5  ;;  %v433_v6 = vld [vmem:[%s4621_s15 + $0x60] sm:$0xff]  ;;  %v435_v7 = vld [vmem:[%s4621_s15 + $0x70] sm:$0xff] }
  0x22   : > { %v437_v8 = vld [vmem:[%s4621_s15 + $0x80] sm:$0xff]  ;;  %434 = vst [vmem:[%s4629_s16 + $0x30] sm:$0xff] %v433_v6  ;;  %436 = vst [vmem:[%s4629_s16 + $0x38] sm:$0xff] %v435_v7  ;;  %v439_v9 = vld [vmem:[%s4621_s15 + $0x90] sm:$0xff] }
  0x23   : > { %438 = vst [vmem:[%s4629_s16 + $0x40] sm:$0xff] %v437_v8  ;;  %v441_v10 = vld [vmem:[%s4621_s15 + $0xa0] sm:$0xff]  ;;  %v443_v11 = vld [vmem:[%s4621_s15 + $0xb0] sm:$0xff]  ;;  %440 = vst [vmem:[%s4629_s16 + $0x48] sm:$0xff] %v439_v9 }
  0x24   : > { %442 = vst [vmem:[%s4629_s16 + $0x50] sm:$0xff] %v441_v10  ;;  %444 = vst [vmem:[%s4629_s16 + $0x58] sm:$0xff] %v443_v11  ;;  %v445_v12 = vld [vmem:[%s4621_s15 + $0xc0] sm:$0xff]  ;;  %v447_v13 = vld [vmem:[%s4621_s15 + $0xd0] sm:$0xff] }
  0x25   : > { %v449_v14 = vld [vmem:[%s4621_s15 + $0xe0] sm:$0xff]  ;;  %446 = vst [vmem:[%s4629_s16 + $0x60] sm:$0xff] %v445_v12  ;;  %448 = vst [vmem:[%s4629_s16 + $0x68] sm:$0xff] %v447_v13  ;;  %v451_v15 = vld [vmem:[%s4621_s15 + $0xf0] sm:$0xff] }
  0x26   : > { %450 = vst [vmem:[%s4629_s16 + $0x70] sm:$0xff] %v449_v14  ;;  %v453_v16 = vld [vmem:[%s4621_s15 + $0x100] sm:$0xff]  ;;  %v455_v17 = vld [vmem:[%s4621_s15 + $0x110] sm:$0xff]  ;;  %452 = vst [vmem:[%s4629_s16 + $0x78] sm:$0xff] %v451_v15 }
  0x27   : > { %454 = vst [vmem:[%s4629_s16 + $0x80] sm:$0xff] %v453_v16  ;;  %456 = vst [vmem:[%s4629_s16 + $0x88] sm:$0xff] %v455_v17  ;;  %v457_v18 = vld [vmem:[%s4621_s15 + $0x120] sm:$0xff]  ;;  %v459_v19 = vld [vmem:[%s4621_s15 + $0x130] sm:$0xff] }
  0x28   : > { %v461_v20 = vld [vmem:[%s4621_s15 + $0x140] sm:$0xff]  ;;  %458 = vst [vmem:[%s4629_s16 + $0x90] sm:$0xff] %v457_v18  ;;  %460 = vst [vmem:[%s4629_s16 + $0x98] sm:$0xff] %v459_v19  ;;  %v463_v21 = vld [vmem:[%s4621_s15 + $0x150] sm:$0xff] }
  0x29   : > { %462 = vst [vmem:[%s4629_s16 + $0xa0] sm:$0xff] %v461_v20  ;;  %v465_v22 = vld [vmem:[%s4621_s15 + $0x160] sm:$0xff]  ;;  %v467_v23 = vld [vmem:[%s4621_s15 + $0x170] sm:$0xff]  ;;  %464 = vst [vmem:[%s4629_s16 + $0xa8] sm:$0xff] %v463_v21 }
  0x2a   : > { %466 = vst [vmem:[%s4629_s16 + $0xb0] sm:$0xff] %v465_v22  ;;  %468 = vst [vmem:[%s4629_s16 + $0xb8] sm:$0xff] %v467_v23  ;;  %v469_v24 = vld [vmem:[%s4621_s15 + $0x180] sm:$0xff]  ;;  %v471_v25 = vld [vmem:[%s4621_s15 + $0x190] sm:$0xff] }
  0x2b   : > { %v473_v26 = vld [vmem:[%s4621_s15 + $0x1a0] sm:$0xff]  ;;  %470 = vst [vmem:[%s4629_s16 + $0xc0] sm:$0xff] %v469_v24  ;;  %472 = vst [vmem:[%s4629_s16 + $0xc8] sm:$0xff] %v471_v25  ;;  %v475_v27 = vld [vmem:[%s4621_s15 + $0x1b0] sm:$0xff] }
  0x2c   : > { %474 = vst [vmem:[%s4629_s16 + $0xd0] sm:$0xff] %v473_v26  ;;  %476 = vst [vmem:[%s4629_s16 + $0xd8] sm:$0xff] %v475_v27 }
  0x2d PF: > { %p3369_p10 = scmp.ge.s32.totalorder %s4500_s20, 1  ;;  %p481_p11 = scmp.lt.s32.totalorder %s4500_s20, 3 }
  0x2f   : > { %p482_p12 = pnand %p3369_p10, %p481_p11 }
  0x31   : > { %485 = sbr.rel (%p482_p12) target bundleno = 1675 (0x68b), region = 98 }
  0x38   : > { %v556_v28 = vld [vmem:[%s6450_s1 + $0x8] sm:$0xff]  ;;  %v558_v29 = vld [vmem:[%s6450_s1 + $0x18] sm:$0xff]  ;;  %v555_v30 = vld [vmem:[%s6450_s1] sm:$0xff]  ;;  %vm645_vm0 = vcmask 1043456   ;;  %v6463_v35 = vmov 0.0   ;;  %s4703_s25 = sand.u32 1, %s4492_s18  }
  0x39   : > { %v3837_v31 = vpack.c.bf16 %v558_v29, %v556_v28  ;;  %v557_v32 = vld [vmem:[%s6450_s1 + $0x10] sm:$0xff]  ;;  %v560_v33 = vld [vmem:[%s6450_s1 + $0x28] sm:$0xff]  ;;  %v562_v34 = vld [vmem:[%s6450_s1 + $0x38] sm:$0xf]  ;;  %934 = vmatprep.mubr.f32.mxu0 %v6463_v35  ;;  %716 = vmatprep.mubr.f32.mxu1 %v6463_v35  ;;  %vm4503_vm1 = vmmov 1   ;;  %s4394_s14 = smul.u32 224, %s4703_s25 }
  0x3a   : > { %v3839_v36 = vpack.c.bf16 %v557_v32, %v555_v30  ;;  %vm4707_vm2 = vmpackc.low %vm645_vm0, %vm4503_vm1  ;;  %v3841_v38 = vpack.c.bf16 %v562_v34, %v560_v33  ;;  %v559_v39 = vld [vmem:[%s6450_s1 + $0x20] sm:$0xff]  ;;  %v561_v40 = vld [vmem:[%s6450_s1 + $0x30] sm:$0xf]  ;;  %vm572_vm3 = vcmask 228352   ;;  %vm4505_vm4 = vmmov 0   ;;  %s3370_s13 = sshll.u32 %s4703_s25, 3 }
  0x3b   : > { %3838 = vmatprep.subr.bf16.mxu0 %v3837_v31  ;;  %v3432_v41 = vld [vmem:[%s6450_s1 + $0x88] sm:$0xff]  ;;  %v3434_v42 = vld [vmem:[%s6450_s1 + $0x98] sm:$0xff]  ;;  %v3844_v43 = vpack.c.bf16 %v561_v40, %v559_v39  ;;  %v3431_v45 = vld [vmem:[%s6450_s1 + $0x80] sm:$0xff]  ;;  %s4740_s21 = scalar_lea.vmem [#allocation2], %s4394_s14  ;;  %vm3115_vm5 = vcmask 982016   ;;  %vm3208_vm6 = vcmask 687104  }
  0x3c   : > { %3840 = vmatpush1.bf16.msra.mxu0 %v3839_v36  ;;  %v3847_v44 = vpack.c.bf16 %v3434_v42, %v3432_v41  ;;  %v3433_v46 = vld [vmem:[%s6450_s1 + $0x90] sm:$0xff]  ;;  %v3436_v47 = vld [vmem:[%s6450_s1 + $0xa8] sm:$0xff]  ;;  %v3438_v48 = vld [vmem:[%s6450_s1 + $0xb8] sm:$0xf]  ;;  %s6481_s16 = sadd.s32 4294967295, %s4500_s20   ;;  %s526_s0 = scalar_lea.vmem [#allocation3], %s3370_s13 }
  0x3d   : > { %3843 = vmatprep.subr.msk.bf16.mxu0 %vm4707_vm2, %v3841_v38  ;;  %v527_v49 = vld [vmem:[%s4740_s21] sm:$0xff]  ;;  %v3849_v50 = vpack.c.bf16 %v3433_v46, %v3431_v45  ;;  %v3851_v51 = vpack.c.bf16 %v3438_v48, %v3436_v47  ;;  %v3437_v53 = vld [vmem:[%s6450_s1 + $0xb0] sm:$0xf]  ;;  %v4752_v54 = vld [vmem:[%s4740_s21 + $0x8] sm:$0xff]  ;;  %s3668_s22 = sshll.u32 %s6481_s16, 7  ;;  %s3287_s12 = scalar_lea.sflag [#allocation4], %s4703_s25 }
  0x3e   : > { %v3435_v52 = vld [vmem:[%s6450_s1 + $0xa0] sm:$0xff]  ;;  %v3466_v56 = vld [vmem:[%s6450_s1 + $0xc8] sm:$0xff]  ;;  %v3468_v57 = vld [vmem:[%s6450_s1 + $0xd8] sm:$0xff]  ;;  %s6405_s30 = scalar_lea.hbm %s6460_s11, %s3668_s22  ;;  %s4506_s13 = smov [#allocation3]  }
  0x3f   : > { %v3854_v55 = vpack.c.bf16 %v3437_v53, %v3435_v52  ;;  %v3857_v58 = vpack.c.bf16 %v3468_v57, %v3466_v56  ;;  %v4766_v59 = vld [vmem:[%s4740_s21 + $0x10] sm:$0xff]  ;;  %v4774_v60 = vld [vmem:[%s4740_s21 + $0x18] sm:$0xff]  ;;  %v4780_v61 = vld [vmem:[%s4740_s21 + $0x20] sm:$0xff]  ;;  %s4442_s15 = sshll.u32 %s4506_s13, 4  ;;  %s4443_s15 = int_to_ptr.vmem [resolvable:$false] %s4442_s15 }
  0x40   : > { %3846 = vmatpush1.bf16.msk.msra.mxu0 %vm4707_vm2, %v3844_v43  ;;  %v4786_v62 = vld [vmem:[%s4740_s21 + $0x28] sm:$0xff]  ;;  %v4792_v63 = vld [vmem:[%s4740_s21 + $0x30] sm:$0xff]  ;;  %v4798_v0 = vld [vmem:[%s4740_s21 + $0x38] sm:$0xff]  ;;  %s4444_s16 = scalar_lea.vmem %s4443_s15, 256 }
  0x41   : > { %3848 = vmatprep.subr.bf16.mxu0 %v3847_v44  ;;  %v4804_v1 = vld [vmem:[%s4740_s21 + $0x40] sm:$0xff]  ;;  %v4810_v2 = vld [vmem:[%s4740_s21 + $0x48] sm:$0xff]  ;;  %v4816_v3 = vld [vmem:[%s4740_s21 + $0x50] sm:$0xff] }
  0x42   : > { %v4822_v4 = vld [vmem:[%s4740_s21 + $0x58] sm:$0xff]  ;;  %v4828_v5 = vld [vmem:[%s4740_s21 + $0x60] sm:$0xff]  ;;  %v4834_v6 = vld [vmem:[%s4740_s21 + $0x68] sm:$0xff] }
  0x43   : > { %3407 = vmatmul.mubr.msk.f32.vlgmr.msra.gmra.mrb[0].mxu0 %vm572_vm3, %v527_v49  ;;  %v4840_v7 = vld [vmem:[%s4740_s21 + $0x70] sm:$0xff]  ;;  %v4846_v8 = vld [vmem:[%s4740_s21 + $0x78] sm:$0xff]  ;;  %v4852_v9 = vld [vmem:[%s4740_s21 + $0x80] sm:$0xff] }
  0x44   : > { %3850 = vmatpush1.bf16.msra.mxu0 %v3849_v50  ;;  %940 = vmatprep.mubr.f32.mxu0 %v6463_v35  ;;  %v4858_v10 = vld [vmem:[%s4740_s21 + $0x88] sm:$0xff]  ;;  %v4864_v11 = vld [vmem:[%s4740_s21 + $0x90] sm:$0xff]  ;;  %v4870_v12 = vld [vmem:[%s4740_s21 + $0x98] sm:$0xff] }
  0x45   : > { %3853 = vmatprep.subr.msk.bf16.mxu0 %vm4707_vm2, %v3851_v51  ;;  %v4876_v13 = vld [vmem:[%s4740_s21 + $0xa0] sm:$0xff]  ;;  %v4882_v14 = vld [vmem:[%s4740_s21 + $0xa8] sm:$0xff]  ;;  %v4888_v15 = vld [vmem:[%s4740_s21 + $0xb0] sm:$0xff] }
  0x46   : > { %v4894_v16 = vld [vmem:[%s4740_s21 + $0xb8] sm:$0xff]  ;;  %v3465_v17 = vld [vmem:[%s6450_s1 + $0xc0] sm:$0xff]  ;;  %v3467_v18 = vld [vmem:[%s6450_s1 + $0xd0] sm:$0xff] }
  0x47   : > { %3408 = vmatmul.mubr.msk.f32.gmra.mrb[2].mxu0 %vm572_vm3, %v4752_v54  ;;  %v3470_v19 = vld [vmem:[%s6450_s1 + $0xe8] sm:$0xff]  ;;  %v3472_v20 = vld [vmem:[%s6450_s1 + $0xf8] sm:$0xf]  ;;  %v3859_v21 = vpack.c.bf16 %v3467_v18, %v3465_v17  ;;  %v3469_v23 = vld [vmem:[%s6450_s1 + $0xe0] sm:$0xff] }
  0x48   : > { %946 = vmatprep.mubr.f32.mxu0 %v6463_v35  ;;  %3856 = vmatpush1.bf16.msk.msra.mxu0 %vm4707_vm2, %v3854_v55  ;;  %v3861_v22 = vpack.c.bf16 %v3472_v20, %v3470_v19  ;;  %v3471_v24 = vld [vmem:[%s6450_s1 + $0xf0] sm:$0xf]  ;;  %v3500_v25 = vld [vmem:[%s6450_s1 + $0x108] sm:$0xff]  ;;  %v3502_v26 = vld [vmem:[%s6450_s1 + $0x118] sm:$0xff] }
  0x49   : > { %3858 = vmatprep.subr.bf16.mxu0 %v3857_v58  ;;  %v3864_v27 = vpack.c.bf16 %v3471_v24, %v3469_v23  ;;  %v3867_v28 = vpack.c.bf16 %v3502_v26, %v3500_v25  ;;  %v3372_v29 = vld [vmem:[%s6450_s1 + $0x48] sm:$0xff]  ;;  %v3374_v30 = vld [vmem:[%s6450_s1 + $0x58] sm:$0xff]  ;;  %v3371_v32 = vld [vmem:[%s6450_s1 + $0x40] sm:$0xff] }
  0x4a   : > { %v3827_v31 = vpack.c.bf16 %v3374_v30, %v3372_v29  ;;  %v3373_v33 = vld [vmem:[%s6450_s1 + $0x50] sm:$0xff]  ;;  %v3376_v36 = vld [vmem:[%s6450_s1 + $0x68] sm:$0xff]  ;;  %v3378_v38 = vld [vmem:[%s6450_s1 + $0x78] sm:$0xf] }
  0x4b   : > { %3409 = vmatmul.mubr.msk.f32.gmra.mrb[4].mxu0 %vm572_vm3, %v4766_v59  ;;  %v3829_v34 = vpack.c.bf16 %v3373_v33, %v3371_v32  ;;  %v3831_v39 = vpack.c.bf16 %v3378_v38, %v3376_v36  ;;  %v3375_v40 = vld [vmem:[%s6450_s1 + $0x60] sm:$0xff]  ;;  %v3377_v41 = vld [vmem:[%s6450_s1 + $0x70] sm:$0xf]  ;;  %v5049_v44 = vld [vmem:[%s4740_s21 + $0xc8] sm:$0xff] }
  0x4c   : > { %952 = vmatprep.mubr.f32.mxu0 %v6463_v35  ;;  %3828 = vmatprep.subr.bf16.mxu1 %v3827_v31  ;;  %v3834_v42 = vpack.c.bf16 %v3377_v41, %v3375_v40  ;;  %v5040_v43 = vld [vmem:[%s4740_s21 + $0xc0] sm:$0xff]  ;;  %v3501_v46 = vld [vmem:[%s6450_s1 + $0x110] sm:$0xff]  ;;  %v3504_v47 = vld [vmem:[%s6450_s1 + $0x128] sm:$0xff] }
  0x4d   : > { %3830 = vmatpush1.bf16.msra.mxu1 %v3829_v34  ;;  %v3499_v45 = vld [vmem:[%s6450_s1 + $0x100] sm:$0xff]  ;;  %v3506_v48 = vld [vmem:[%s6450_s1 + $0x138] sm:$0xf]  ;;  %v3505_v52 = vld [vmem:[%s6450_s1 + $0x130] sm:$0xf] }
  0x4e   : > { %3833 = vmatprep.subr.msk.bf16.mxu1 %vm4707_vm2, %v3831_v39  ;;  %v3869_v49 = vpack.c.bf16 %v3501_v46, %v3499_v45  ;;  %v3871_v50 = vpack.c.bf16 %v3506_v48, %v3504_v47  ;;  %v3503_v51 = vld [vmem:[%s6450_s1 + $0x120] sm:$0xff]  ;;  %v3534_v37 = vld [vmem:[%s6452_s3 + $0x108] sm:$0xff]  ;;  %v3535_v57 = vld [vmem:[%s6452_s3 + $0x110] sm:$0xff] }
  0x4f   : > { %3410 = vmatmul.mubr.msk.f32.gmra.mrb[6].mxu0 %vm572_vm3, %v4774_v60  ;;  %v3874_v53 = vpack.c.bf16 %v3505_v52, %v3503_v51  ;;  %v3533_v55 = vld [vmem:[%s6452_s3 + $0x100] sm:$0xff]  ;;  %v3538_v58 = vld [vmem:[%s6452_s3 + $0x128] sm:$0xff]  ;;  %v3539_v19 = vld [vmem:[%s6452_s3 + $0x130] sm:$0xff] }
  0x50   : > { %958 = vmatprep.mubr.f32.mxu0 %v6463_v35  ;;  %v3537_v18 = vld [vmem:[%s6452_s3 + $0x120] sm:$0xff]  ;;  %v3542_v20 = vld [vmem:[%s6452_s3 + $0x148] sm:$0xff]  ;;  %v3543_v25 = vld [vmem:[%s6452_s3 + $0x150] sm:$0xff] }
  0x51   : > { %3836 = vmatpush1.bf16.msk.msra.mxu1 %vm4707_vm2, %v3834_v42  ;;  %v3541_v24 = vld [vmem:[%s6452_s3 + $0x140] sm:$0xff]  ;;  %v3546_v26 = vld [vmem:[%s6452_s3 + $0x168] sm:$0xff]  ;;  %v3547_v31 = vld [vmem:[%s6452_s3 + $0x170] sm:$0xff] }
  0x52   : > { %v3545_v30 = vld [vmem:[%s6452_s3 + $0x160] sm:$0xff]  ;;  %v553_v33 = vld [vmem:[%s4740_s21 + $0xd0] sm:$0xff]  ;;  %v3558_v36 = vld [vmem:[%s6452_s3 + $0x1c8] sm:$0xff] }
  0x53   : > { %3411 = vmatmul.mubr.msk.f32.gmra.mrb[8].mxu0 %vm572_vm3, %v4780_v61  ;;  %v3891_v32 = vpack.c.bf16 %v3547_v31, %v3545_v30  ;;  %v3560_v38 = vld [vmem:[%s6452_s3 + $0x1d8] sm:$0xff]  ;;  %v3557_v40 = vld [vmem:[%s6452_s3 + $0x1c0] sm:$0xff]  ;;  %v3559_v41 = vld [vmem:[%s6452_s3 + $0x1d0] sm:$0xff] }
  0x54   : > { %964 = vmatprep.mubr.f32.mxu0 %v6463_v35  ;;  %3381 = vmatmul.mubr.msk.f32.vlgmr.msra.gmra.mrb[0].mxu1 %vm572_vm3, %v4752_v54  ;;  %v3536_v54 = vld [vmem:[%s6452_s3 + $0x118] sm:$0xff]  ;;  %v3901_v39 = vpack.c.bf16 %v3560_v38, %v3558_v36  ;;  %v3562_v45 = vld [vmem:[%s6452_s3 + $0x1e8] sm:$0xff]  ;;  %v3561_v48 = vld [vmem:[%s6452_s3 + $0x1e0] sm:$0xff]  ;;  %v1906_v36 = vlaneseq }
  0x55   : > { %722 = vmatprep.mubr.f32.mxu1 %v6463_v35  ;;  %v3877_v56 = vpack.c.bf16 %v3536_v54, %v3534_v37  ;;  %v3564_v46 = vld [vmem:[%s6452_s3 + $0x1f8] sm:$0xff] }
  0x56   : > { %v3905_v47 = vpack.c.bf16 %v3564_v46, %v3562_v45  ;;  %v5467_v38 = vshrl.u32 %v1906_v36, 7 }
  0x57   : > { %3412 = vmatmul.mubr.msk.f32.gmra.mrb[10].mxu0 %vm572_vm3, %v4786_v62  ;;  %3878 = vmatprep.subr.bf16.mxu1 %v3877_v56 }
  0x58   : > { %970 = vmatprep.mubr.f32.mxu0 %v6463_v35  ;;  %3382 = vmatmul.mubr.msk.f32.gmra.mrb[2].mxu1 %vm572_vm3, %v4766_v59  ;;  %6475 = vst [vmem:[#allocation7_spill] sm:$0xff] %v5467_v38 }
  0x59   : > { %728 = vmatprep.mubr.f32.mxu1 %v6463_v35 }
  0x5b   : > { %3413 = vmatmul.mubr.msk.f32.gmra.mrb[12].mxu0 %vm572_vm3, %v4792_v63 }
  0x5c   : > { %976 = vmatprep.mubr.f32.mxu0 %v6463_v35  ;;  %3383 = vmatmul.mubr.msk.f32.gmra.mrb[4].mxu1 %vm572_vm3, %v4774_v60 }
  0x5d   : > { %734 = vmatprep.mubr.f32.mxu1 %v6463_v35 }
  0x5f   : > { %3414 = vmatmul.mubr.msk.f32.gmra.mrb[14].mxu0 %vm572_vm3, %v4798_v0 }
  0x60   : > { %982 = vmatprep.mubr.f32.mxu0 %v6463_v35  ;;  %3384 = vmatmul.mubr.msk.f32.gmra.mrb[6].mxu1 %vm572_vm3, %v4780_v61 }
  0x61   : > { %740 = vmatprep.mubr.f32.mxu1 %v6463_v35 }
  0x63   : > { %3415 = vmatmul.mubr.msk.f32.gmra.mrb[16].mxu0 %vm572_vm3, %v4804_v1 }
  0x64   : > { %988 = vmatprep.mubr.f32.mxu0 %v6463_v35  ;;  %3385 = vmatmul.mubr.msk.f32.gmra.mrb[8].mxu1 %vm572_vm3, %v4786_v62 }
  0x65   : > { %746 = vmatprep.mubr.f32.mxu1 %v6463_v35 }
  0x67   : > { %3416 = vmatmul.mubr.msk.f32.gmra.mrb[18].mxu0 %vm572_vm3, %v4810_v2 }
  0x68   : > { %994 = vmatprep.mubr.f32.mxu0 %v6463_v35  ;;  %3386 = vmatmul.mubr.msk.f32.gmra.mrb[10].mxu1 %vm572_vm3, %v4792_v63 }
  0x69   : > { %752 = vmatprep.mubr.f32.mxu1 %v6463_v35 }
  0x6b   : > { %3417 = vmatmul.mubr.msk.f32.gmra.mrb[20].mxu0 %vm572_vm3, %v4816_v3 }
  0x6c   : > { %1000 = vmatprep.mubr.f32.mxu0 %v6463_v35  ;;  %3387 = vmatmul.mubr.msk.f32.gmra.mrb[12].mxu1 %vm572_vm3, %v4798_v0 }
  0x6d   : > { %758 = vmatprep.mubr.f32.mxu1 %v6463_v35 }
  0x6f   : > { %3418 = vmatmul.mubr.msk.f32.gmra.mrb[22].mxu0 %vm572_vm3, %v4822_v4 }
  0x70   : > { %1006 = vmatprep.mubr.f32.mxu0 %v6463_v35  ;;  %3388 = vmatmul.mubr.msk.f32.gmra.mrb[14].mxu1 %vm572_vm3, %v4804_v1 }
  0x71   : > { %764 = vmatprep.mubr.f32.mxu1 %v6463_v35 }
  0x73   : > { %3419 = vmatmul.mubr.msk.f32.gmra.mrb[24].mxu0 %vm572_vm3, %v4828_v5 }
  0x74   : > { %1012 = vmatprep.mubr.f32.mxu0 %v6463_v35  ;;  %3389 = vmatmul.mubr.msk.f32.gmra.mrb[16].mxu1 %vm572_vm3, %v4810_v2 }
  0x75   : > { %770 = vmatprep.mubr.f32.mxu1 %v6463_v35 }
  0x77   : > { %3420 = vmatmul.mubr.msk.f32.gmra.mrb[26].mxu0 %vm572_vm3, %v4834_v6 }
  0x78   : > { %1018 = vmatprep.mubr.f32.mxu0 %v6463_v35  ;;  %3390 = vmatmul.mubr.msk.f32.gmra.mrb[18].mxu1 %vm572_vm3, %v4816_v3 }
  0x79   : > { %776 = vmatprep.mubr.f32.mxu1 %v6463_v35 }
  0x7b   : > { %3421 = vmatmul.mubr.msk.f32.gmra.mrb[28].mxu0 %vm572_vm3, %v4840_v7 }
  0x7c   : > { %1024 = vmatprep.mubr.f32.mxu0 %v6463_v35  ;;  %3391 = vmatmul.mubr.msk.f32.gmra.mrb[20].mxu1 %vm572_vm3, %v4822_v4 }
  0x7d   : > { %782 = vmatprep.mubr.f32.mxu1 %v6463_v35 }
  0x7f   : > { %3422 = vmatmul.mubr.msk.f32.gmra.mrb[30].mxu0 %vm572_vm3, %v4846_v8 }
  0x80   : > { %1030 = vmatprep.mubr.f32.mxu0 %v6463_v35  ;;  %3392 = vmatmul.mubr.msk.f32.gmra.mrb[22].mxu1 %vm572_vm3, %v4828_v5 }
  0x81   : > { %788 = vmatprep.mubr.f32.mxu1 %v6463_v35 }
  0x83   : > { %3423 = vmatmul.mubr.msk.f32.gmra.mrb[32].mxu0 %vm572_vm3, %v4852_v9 }
  0x84   : > { %1036 = vmatprep.mubr.f32.mxu0 %v6463_v35  ;;  %3393 = vmatmul.mubr.msk.f32.gmra.mrb[24].mxu1 %vm572_vm3, %v4834_v6 }
  0x85   : > { %794 = vmatprep.mubr.f32.mxu1 %v6463_v35 }
  0x87   : > { %3424 = vmatmul.mubr.msk.f32.gmra.mrb[34].mxu0 %vm572_vm3, %v4858_v10 }
  0x88   : > { %1042 = vmatprep.mubr.f32.mxu0 %v6463_v35  ;;  %3394 = vmatmul.mubr.msk.f32.gmra.mrb[26].mxu1 %vm572_vm3, %v4840_v7 }
  0x89   : > { %800 = vmatprep.mubr.f32.mxu1 %v6463_v35 }
  0x8b   : > { %3425 = vmatmul.mubr.msk.f32.gmra.mrb[36].mxu0 %vm572_vm3, %v4864_v11 }
  0x8c   : > { %1048 = vmatprep.mubr.f32.mxu0 %v6463_v35  ;;  %3395 = vmatmul.mubr.msk.f32.gmra.mrb[28].mxu1 %vm572_vm3, %v4846_v8 }
  0x8d   : > { %806 = vmatprep.mubr.f32.mxu1 %v6463_v35 }
  0x8f   : > { %3426 = vmatmul.mubr.msk.f32.gmra.mrb[38].mxu0 %vm572_vm3, %v4870_v12 }
  0x90   : > { %1054 = vmatprep.mubr.f32.mxu0 %v6463_v35  ;;  %3396 = vmatmul.mubr.msk.f32.gmra.mrb[30].mxu1 %vm572_vm3, %v4852_v9 }
  0x91   : > { %812 = vmatprep.mubr.f32.mxu1 %v6463_v35 }
  0x93   : > { %3427 = vmatmul.mubr.msk.f32.gmra.mrb[40].mxu0 %vm572_vm3, %v4876_v13 }
  0x94   : > { %1060 = vmatprep.mubr.f32.mxu0 %v6463_v35  ;;  %3397 = vmatmul.mubr.msk.f32.gmra.mrb[32].mxu1 %vm572_vm3, %v4858_v10 }
  0x95   : > { %818 = vmatprep.mubr.f32.mxu1 %v6463_v35 }
  0x97   : > { %3428 = vmatmul.mubr.msk.f32.gmra.mrb[42].mxu0 %vm572_vm3, %v4882_v14 }
  0x98   : > { %1066 = vmatprep.mubr.f32.mxu0 %v6463_v35  ;;  %3398 = vmatmul.mubr.msk.f32.gmra.mrb[34].mxu1 %vm572_vm3, %v4864_v11 }
  0x99   : > { %824 = vmatprep.mubr.f32.mxu1 %v6463_v35 }
  0x9b   : > { %3429 = vmatmul.mubr.msk.f32.gmra.mrb[44].mxu0 %vm572_vm3, %v4888_v15 }
  0x9c   : > { %1072 = vmatprep.mubr.f32.mxu0 %v6463_v35  ;;  %3399 = vmatmul.mubr.msk.f32.gmra.mrb[36].mxu1 %vm572_vm3, %v4870_v12 }
  0x9d   : > { %830 = vmatprep.mubr.f32.mxu1 %v6463_v35 }
  0x9f   : > { %3430 = vmatmul.mubr.msk.f32.gmra.mrb[46].mxu0 %vm572_vm3, %v4894_v16 }
  0xa0   : > { %1161 = vmatprep.mubr.f32.mxu0 %v6463_v35  ;;  %3400 = vmatmul.mubr.msk.f32.gmra.mrb[38].mxu1 %vm572_vm3, %v4876_v13 }
  0xa1   : > { %836 = vmatprep.mubr.f32.mxu1 %v6463_v35 }
  0xa3   : > { %3441 = vmatmul.mubr.msk.f32.vlgmr.msra.gmra.mrb[0].mxu0 %vm572_vm3, %v4766_v59  ;;  %v3540_v59 = vld [vmem:[%s6452_s3 + $0x138] sm:$0xff] }
  0xa4   : > { %3860 = vmatpush1.bf16.msra.mxu0 %v3859_v21  ;;  %1167 = vmatprep.mubr.f32.mxu0 %v6463_v35  ;;  %v3881_v17 = vpack.c.bf16 %v3540_v59, %v3538_v58  ;;  %v3544_v21 = vld [vmem:[%s6452_s3 + $0x158] sm:$0xff] }
  0xa5   : > { %3863 = vmatprep.subr.msk.bf16.mxu0 %vm4707_vm2, %v3861_v22  ;;  %3401 = vmatmul.mubr.msk.f32.gmra.mrb[40].mxu1 %vm572_vm3, %v4882_v14  ;;  %v3883_v22 = vpack.c.bf16 %v3539_v19, %v3537_v18  ;;  %v3885_v23 = vpack.c.bf16 %v3544_v21, %v3542_v20 }
  0xa6   : > { %842 = vmatprep.mubr.f32.mxu1 %v6463_v35 }
  0xa7   : > { %3442 = vmatmul.mubr.msk.f32.gmra.mrb[2].mxu0 %vm572_vm3, %v4774_v60 }
  0xa8   : > { %1173 = vmatprep.mubr.f32.mxu0 %v6463_v35  ;;  %3866 = vmatpush1.bf16.msk.msra.mxu0 %vm4707_vm2, %v3864_v27  ;;  %v3548_v27 = vld [vmem:[%s6452_s3 + $0x178] sm:$0xff] }
  0xa9   : > { %3868 = vmatprep.subr.bf16.mxu0 %v3867_v28  ;;  %3402 = vmatmul.mubr.msk.f32.gmra.mrb[42].mxu1 %vm572_vm3, %v4888_v15  ;;  %v3887_v28 = vpack.c.bf16 %v3543_v25, %v3541_v24  ;;  %v3889_v29 = vpack.c.bf16 %v3548_v27, %v3546_v26 }
  0xaa   : > { %848 = vmatprep.mubr.f32.mxu1 %v6463_v35 }
  0xab   : > { %3443 = vmatmul.mubr.msk.f32.gmra.mrb[4].mxu0 %vm572_vm3, %v4780_v61 }
  0xac   : > { %1179 = vmatprep.mubr.f32.mxu0 %v6463_v35 }
  0xad   : > { %3403 = vmatmul.mubr.msk.f32.gmra.mrb[44].mxu1 %vm572_vm3, %v4894_v16 }
  0xae   : > { %854 = vmatprep.mubr.f32.mxu1 %v6463_v35 }
  0xaf   : > { %3444 = vmatmul.mubr.msk.f32.gmra.mrb[6].mxu0 %vm572_vm3, %v4786_v62 }
  0xb0   : > { %1185 = vmatprep.mubr.f32.mxu0 %v6463_v35 }
  0xb1   : > { %3404 = vmatmul.mubr.msk.f32.gmra.mrb[46].mxu1 %vm572_vm3, %v5040_v43 }
  0xb2   : > { %2177 = vmatprep.mubr.f32.mxu1 %v6463_v35 }
  0xb3   : > { %3445 = vmatmul.mubr.msk.f32.gmra.mrb[8].mxu0 %vm572_vm3, %v4792_v63 }
  0xb4   : > { %1191 = vmatprep.mubr.f32.mxu0 %v6463_v35 }
  0xb7   : > { %3446 = vmatmul.mubr.msk.f32.gmra.mrb[10].mxu0 %vm572_vm3, %v4798_v0 }
  0xb8   : > { %1197 = vmatprep.mubr.f32.mxu0 %v6463_v35 }
  0xbb   : > { %3447 = vmatmul.mubr.msk.f32.gmra.mrb[12].mxu0 %vm572_vm3, %v4804_v1 }
  0xbc   : > { %1203 = vmatprep.mubr.f32.mxu0 %v6463_v35 }
  0xbf   : > { %3448 = vmatmul.mubr.msk.f32.gmra.mrb[14].mxu0 %vm572_vm3, %v4810_v2 }
  0xc0   : > { %1209 = vmatprep.mubr.f32.mxu0 %v6463_v35 }
  0xc3   : > { %3449 = vmatmul.mubr.msk.f32.gmra.mrb[16].mxu0 %vm572_vm3, %v4816_v3 }
  0xc4   : > { %1215 = vmatprep.mubr.f32.mxu0 %v6463_v35 }
  0xc7   : > { %3450 = vmatmul.mubr.msk.f32.gmra.mrb[18].mxu0 %vm572_vm3, %v4822_v4 }
  0xc8   : > { %1221 = vmatprep.mubr.f32.mxu0 %v6463_v35 }
  0xcb   : > { %3451 = vmatmul.mubr.msk.f32.gmra.mrb[20].mxu0 %vm572_vm3, %v4828_v5 }
  0xcc   : > { %1227 = vmatprep.mubr.f32.mxu0 %v6463_v35 }
  0xcf   : > { %3452 = vmatmul.mubr.msk.f32.gmra.mrb[22].mxu0 %vm572_vm3, %v4834_v6 }
  0xd0   : > { %1233 = vmatprep.mubr.f32.mxu0 %v6463_v35 }
  0xd3   : > { %3453 = vmatmul.mubr.msk.f32.gmra.mrb[24].mxu0 %vm572_vm3, %v4840_v7 }
  0xd4   : > { %1239 = vmatprep.mubr.f32.mxu0 %v6463_v35 }
  0xd7   : > { %3454 = vmatmul.mubr.msk.f32.gmra.mrb[26].mxu0 %vm572_vm3, %v4846_v8 }
  0xd8   : > { %1245 = vmatprep.mubr.f32.mxu0 %v6463_v35 }
  0xdb   : > { %3455 = vmatmul.mubr.msk.f32.gmra.mrb[28].mxu0 %vm572_vm3, %v4852_v9 }
  0xdc   : > { %1251 = vmatprep.mubr.f32.mxu0 %v6463_v35 }
  0xdf   : > { %3456 = vmatmul.mubr.msk.f32.gmra.mrb[30].mxu0 %vm572_vm3, %v4858_v10 }
  0xe0   : > { %1257 = vmatprep.mubr.f32.mxu0 %v6463_v35 }
  0xe3   : > { %3457 = vmatmul.mubr.msk.f32.gmra.mrb[32].mxu0 %vm572_vm3, %v4864_v11 }
  0xe4   : > { %1263 = vmatprep.mubr.f32.mxu0 %v6463_v35 }
  0xe7   : > { %3458 = vmatmul.mubr.msk.f32.gmra.mrb[34].mxu0 %vm572_vm3, %v4870_v12 }
  0xe8   : > { %1269 = vmatprep.mubr.f32.mxu0 %v6463_v35 }
  0xeb   : > { %3459 = vmatmul.mubr.msk.f32.gmra.mrb[36].mxu0 %vm572_vm3, %v4876_v13 }
  0xec   : > { %1275 = vmatprep.mubr.f32.mxu0 %v6463_v35 }
  0xef   : > { %3460 = vmatmul.mubr.msk.f32.gmra.mrb[38].mxu0 %vm572_vm3, %v4882_v14 }
  0xf0   : > { %1281 = vmatprep.mubr.f32.mxu0 %v6463_v35 }
  0xf3   : > { %3461 = vmatmul.mubr.msk.f32.gmra.mrb[40].mxu0 %vm572_vm3, %v4888_v15 }
  0xf4   : > { %1287 = vmatprep.mubr.f32.mxu0 %v6463_v35 }
  0xf7   : > { %3462 = vmatmul.mubr.msk.f32.gmra.mrb[42].mxu0 %vm572_vm3, %v4894_v16 }
  0xf8   : > { %1293 = vmatprep.mubr.f32.mxu0 %v6463_v35 }
  0xfb   : > { %3463 = vmatmul.mubr.msk.f32.gmra.mrb[44].mxu0 %vm572_vm3, %v5040_v43 }
  0xfc   : > { %1299 = vmatprep.mubr.f32.mxu0 %v6463_v35 }
  0xff   : > { %3464 = vmatmul.mubr.msk.f32.gmra.mrb[46].mxu0 %vm572_vm3, %v5049_v44 }
 0x100   : > { %1436 = vmatprep.mubr.f32.mxu0 %v6463_v35 }
 0x103   : > { %3475 = vmatmul.mubr.msk.f32.vlgmr.msra.gmra.mrb[0].mxu0 %vm572_vm3, %v4774_v60  ;;  %v3879_v60 = vpack.c.bf16 %v3535_v57, %v3533_v55 }
 0x104   : > { %3870 = vmatpush1.bf16.msra.mxu0 %v3869_v49  ;;  %1442 = vmatprep.mubr.f32.mxu0 %v6463_v35  ;;  %v3563_v49 = vld [vmem:[%s6452_s3 + $0x1f0] sm:$0xff] }
 0x105   : > { %3873 = vmatprep.subr.msk.bf16.mxu0 %vm4707_vm2, %v3871_v50  ;;  %3880 = vmatpush1.bf16.msra.mxu1 %v3879_v60  ;;  %v3907_v51 = vpack.c.bf16 %v3563_v49, %v3561_v48 }
 0x106   : > { %3882 = vmatprep.subr.bf16.mxu1 %v3881_v17 }
 0x107   : > { %3476 = vmatmul.mubr.msk.f32.gmra.mrb[2].mxu0 %vm572_vm3, %v4780_v61 }
 0x108   : > { %1448 = vmatprep.mubr.f32.mxu0 %v6463_v35  ;;  %3876 = vmatpush1.bf16.msk.msra.mxu0 %vm4707_vm2, %v3874_v53 }
 0x109   : > { %3884 = vmatpush1.bf16.msra.mxu1 %v3883_v22  ;;  %v2049_v22 = vld [vmem:[%s6452_s3 + $0x8] sm:$0xff] }
 0x10a   : > { %3886 = vmatprep.subr.bf16.mxu1 %v3885_v23  ;;  %v2051_v23 = vld [vmem:[%s6452_s3 + $0x18] sm:$0xff] }
 0x10b   : > { %3477 = vmatmul.mubr.msk.f32.gmra.mrb[4].mxu0 %vm572_vm3, %v4786_v62  ;;  %v3909_v24 = vpack.c.bf16 %v2051_v23, %v2049_v22 }
 0x10c   : > { %1454 = vmatprep.mubr.f32.mxu0 %v6463_v35 }
 0x10d   : > { %3888 = vmatpush1.bf16.msra.mxu1 %v3887_v28 }
 0x10e   : > { %3890 = vmatprep.subr.bf16.mxu1 %v3889_v29 }
 0x10f   : > { %3478 = vmatmul.mubr.msk.f32.gmra.mrb[6].mxu0 %vm572_vm3, %v4792_v63 }
 0x110   : > { %1460 = vmatprep.mubr.f32.mxu0 %v6463_v35 }
 0x111   : > { %3892 = vmatpush1.bf16.msra.mxu1 %v3891_v32 }
 0x113   : > { %3479 = vmatmul.mubr.msk.f32.gmra.mrb[8].mxu0 %vm572_vm3, %v4798_v0 }
 0x114   : > { %1466 = vmatprep.mubr.f32.mxu0 %v6463_v35 }
 0x117   : > { %3480 = vmatmul.mubr.msk.f32.gmra.mrb[10].mxu0 %vm572_vm3, %v4804_v1 }
 0x118   : > { %1472 = vmatprep.mubr.f32.mxu0 %v6463_v35 }
 0x11b   : > { %3481 = vmatmul.mubr.msk.f32.gmra.mrb[12].mxu0 %vm572_vm3, %v4810_v2 }
 0x11c   : > { %1478 = vmatprep.mubr.f32.mxu0 %v6463_v35 }
 0x11f   : > { %3482 = vmatmul.mubr.msk.f32.gmra.mrb[14].mxu0 %vm572_vm3, %v4816_v3 }
 0x120   : > { %1484 = vmatprep.mubr.f32.mxu0 %v6463_v35 }
 0x123   : > { %3483 = vmatmul.mubr.msk.f32.gmra.mrb[16].mxu0 %vm572_vm3, %v4822_v4 }
 0x124   : > { %1490 = vmatprep.mubr.f32.mxu0 %v6463_v35 }
 0x127   : > { %3484 = vmatmul.mubr.msk.f32.gmra.mrb[18].mxu0 %vm572_vm3, %v4828_v5 }
 0x128   : > { %1496 = vmatprep.mubr.f32.mxu0 %v6463_v35 }
 0x12b   : > { %3485 = vmatmul.mubr.msk.f32.gmra.mrb[20].mxu0 %vm572_vm3, %v4834_v6 }
 0x12c   : > { %1502 = vmatprep.mubr.f32.mxu0 %v6463_v35 }
 0x12f   : > { %3486 = vmatmul.mubr.msk.f32.gmra.mrb[22].mxu0 %vm572_vm3, %v4840_v7 }
 0x130   : > { %1508 = vmatprep.mubr.f32.mxu0 %v6463_v35 }
 0x133   : > { %3487 = vmatmul.mubr.msk.f32.gmra.mrb[24].mxu0 %vm572_vm3, %v4846_v8 }
 0x134   : > { %1514 = vmatprep.mubr.f32.mxu0 %v6463_v35 }
 0x137   : > { %3488 = vmatmul.mubr.msk.f32.gmra.mrb[26].mxu0 %vm572_vm3, %v4852_v9 }
 0x138   : > { %1520 = vmatprep.mubr.f32.mxu0 %v6463_v35 }
 0x13b   : > { %3489 = vmatmul.mubr.msk.f32.gmra.mrb[28].mxu0 %vm572_vm3, %v4858_v10 }
 0x13c   : > { %1526 = vmatprep.mubr.f32.mxu0 %v6463_v35 }
 0x13f   : > { %3490 = vmatmul.mubr.msk.f32.gmra.mrb[30].mxu0 %vm572_vm3, %v4864_v11 }
 0x140   : > { %1532 = vmatprep.mubr.f32.mxu0 %v6463_v35 }
 0x143   : > { %3491 = vmatmul.mubr.msk.f32.gmra.mrb[32].mxu0 %vm572_vm3, %v4870_v12 }
 0x144   : > { %1538 = vmatprep.mubr.f32.mxu0 %v6463_v35 }
 0x147   : > { %3492 = vmatmul.mubr.msk.f32.gmra.mrb[34].mxu0 %vm572_vm3, %v4876_v13 }
 0x148   : > { %1544 = vmatprep.mubr.f32.mxu0 %v6463_v35 }
 0x14b   : > { %3493 = vmatmul.mubr.msk.f32.gmra.mrb[36].mxu0 %vm572_vm3, %v4882_v14 }
 0x14c   : > { %1550 = vmatprep.mubr.f32.mxu0 %v6463_v35 }
 0x14f   : > { %3494 = vmatmul.mubr.msk.f32.gmra.mrb[38].mxu0 %vm572_vm3, %v4888_v15 }
 0x150   : > { %1556 = vmatprep.mubr.f32.mxu0 %v6463_v35 }
 0x153   : > { %3495 = vmatmul.mubr.msk.f32.gmra.mrb[40].mxu0 %vm572_vm3, %v4894_v16 }
 0x154   : > { %1562 = vmatprep.mubr.f32.mxu0 %v6463_v35 }
 0x157   : > { %3496 = vmatmul.mubr.msk.f32.gmra.mrb[42].mxu0 %vm572_vm3, %v5040_v43 }
 0x158   : > { %1568 = vmatprep.mubr.f32.mxu0 %v6463_v35 }
 0x15b   : > { %3497 = vmatmul.mubr.msk.f32.gmra.mrb[44].mxu0 %vm572_vm3, %v5049_v44 }
 0x15c   : > { %1574 = vmatprep.mubr.f32.mxu0 %v6463_v35 }
 0x15f   : > { %3498 = vmatmul.mubr.msk.f32.gmra.mrb[46].mxu0 %vm572_vm3, %v553_v33 }
 0x160   : > { %1711 = vmatprep.mubr.f32.mxu0 %v6463_v35 }
 0x163   : > { %3509 = vmatmul.mubr.msk.f32.vlgmr.msra.gmra.mrb[0].mxu0 %vm572_vm3, %v4780_v61  ;;  %v5310_v61 = vpop.f32.mrb[0].mxu1 }
 0x164   : > { %1717 = vmatprep.mubr.f32.mxu0 %v6463_v35 }
 0x167   : > { %3510 = vmatmul.mubr.msk.f32.gmra.mrb[2].mxu0 %vm572_vm3, %v4786_v62  ;;  %v5312_v62 = vpop.f32.mrb[1].mxu1 }
 0x168   : > { %1723 = vmatprep.mubr.f32.mxu0 %v6463_v35 }
 0x16b   : > { %3511 = vmatmul.mubr.msk.f32.gmra.mrb[4].mxu0 %vm572_vm3, %v4792_v63  ;;  %v5317_v63 = vpop.f32.mrb[2].mxu1 }
 0x16c   : > { %1729 = vmatprep.mubr.f32.mxu0 %v6463_v35 }
 0x16f   : > { %3512 = vmatmul.mubr.msk.f32.gmra.mrb[6].mxu0 %vm572_vm3, %v4798_v0  ;;  %v5319_v0 = vpop.f32.mrb[3].mxu1 }
 0x170   : > { %1735 = vmatprep.mubr.f32.mxu0 %v6463_v35 }
 0x173   : > { %3513 = vmatmul.mubr.msk.f32.gmra.mrb[8].mxu0 %vm572_vm3, %v4804_v1  ;;  %v3550_v1 = vld [vmem:[%s6452_s3 + $0x188] sm:$0xff] }
 0x174   : > { %1741 = vmatprep.mubr.f32.mxu0 %v6463_v35 }
 0x177   : > { %3514 = vmatmul.mubr.msk.f32.gmra.mrb[10].mxu0 %vm572_vm3, %v4810_v2  ;;  %v3552_v2 = vld [vmem:[%s6452_s3 + $0x198] sm:$0xff] }
 0x178   : > { %1747 = vmatprep.mubr.f32.mxu0 %v6463_v35 }
 0x17b   : > { %3515 = vmatmul.mubr.msk.f32.gmra.mrb[12].mxu0 %vm572_vm3, %v4816_v3  ;;  %v554_v3 = vld [vmem:[%s4740_s21 + $0xd8] sm:$0xff]  ;;  %s3300_s21 = sshll.u32 %s526_s0, 4  ;;  %s6407_s21 = int_to_ptr.vmem [resolvable:$true] %s3300_s21 }
 0x17c   : > { %1753 = vmatprep.mubr.f32.mxu0 %v6463_v35  ;;  %s4438_s14 = scalar_lea.vmem %s6407_s21, 128  ;;  %p4445_p2 = scmp.lt.s32.totalorder %s6407_s21, %s4443_s15 }
 0x17d   : > { %p4439_p13 = scmp.ne.s32.totalorder %s6407_s21, %s4438_s14  ;;  %p4446_p3 = scmp.lt.s32.totalorder %s4444_s16, %s4438_s14 }
 0x17f   : > { %3516 = vmatmul.mubr.msk.f32.gmra.mrb[14].mxu0 %vm572_vm3, %v4822_v4  ;;  %v3893_v4 = vpack.c.bf16 %v3552_v2, %v3550_v1  ;;  %p4440_p0 = pnand %p4439_p13, %p4605_p6  ;;  %p4447_p4 = por %p4446_p3, %p4445_p2 }
 0x180   : > { %1759 = vmatprep.mubr.f32.mxu0 %v6463_v35 }
 0x181   : > { %3894 = vmatprep.subr.bf16.mxu1 %v3893_v4  ;;  %p4441_p1 = pneg %p4440_p0 }
 0x183   : > { %3517 = vmatmul.mubr.msk.f32.gmra.mrb[16].mxu0 %vm572_vm3, %v4828_v5  ;;  %v3549_v5 = vld [vmem:[%s6452_s3 + $0x180] sm:$0xff]  ;;  %p4448_p5 = pnand %p4447_p4, %p4441_p1 }
 0x184   : > { %1765 = vmatprep.mubr.f32.mxu0 %v6463_v35 }
 0x187   : > { %3518 = vmatmul.mubr.msk.f32.gmra.mrb[18].mxu0 %vm572_vm3, %v4834_v6  ;;  %v3551_v6 = vld [vmem:[%s6452_s3 + $0x190] sm:$0xff] }
 0x188   : > { %1771 = vmatprep.mubr.f32.mxu0 %v6463_v35 }
 0x18b   : > { %3519 = vmatmul.mubr.msk.f32.gmra.mrb[20].mxu0 %vm572_vm3, %v4840_v7  ;;  %v3895_v7 = vpack.c.bf16 %v3551_v6, %v3549_v5 }
 0x18c   : > { %1777 = vmatprep.mubr.f32.mxu0 %v6463_v35 }
 0x18d   : > { %3896 = vmatpush1.bf16.msra.mxu1 %v3895_v7 }
 0x18f   : > { %3520 = vmatmul.mubr.msk.f32.gmra.mrb[22].mxu0 %vm572_vm3, %v4846_v8  ;;  %v5336_v8 = vpop.f32.mrb[4].mxu1 }
 0x190   : > { %1783 = vmatprep.mubr.f32.mxu0 %v6463_v35 }
 0x193   : > { %3521 = vmatmul.mubr.msk.f32.gmra.mrb[24].mxu0 %vm572_vm3, %v4852_v9  ;;  %v5338_v9 = vpop.f32.mrb[5].mxu1 }
 0x194   : > { %1789 = vmatprep.mubr.f32.mxu0 %v6463_v35 }
 0x197   : > { %3522 = vmatmul.mubr.msk.f32.gmra.mrb[26].mxu0 %vm572_vm3, %v4858_v10  ;;  %v3554_v10 = vld [vmem:[%s6452_s3 + $0x1a8] sm:$0xff] }
 0x198   : > { %1795 = vmatprep.mubr.f32.mxu0 %v6463_v35 }
 0x19b   : > { %3523 = vmatmul.mubr.msk.f32.gmra.mrb[28].mxu0 %vm572_vm3, %v4864_v11  ;;  %v3556_v11 = vld [vmem:[%s6452_s3 + $0x1b8] sm:$0xff] }
 0x19c   : > { %1801 = vmatprep.mubr.f32.mxu0 %v6463_v35 }
 0x19f   : > { %3524 = vmatmul.mubr.msk.f32.gmra.mrb[30].mxu0 %vm572_vm3, %v4870_v12  ;;  %v3897_v12 = vpack.c.bf16 %v3556_v11, %v3554_v10 }
 0x1a0   : > { %1807 = vmatprep.mubr.f32.mxu0 %v6463_v35 }
 0x1a1   : > { %3898 = vmatprep.subr.bf16.mxu1 %v3897_v12 }
 0x1a3   : > { %3525 = vmatmul.mubr.msk.f32.gmra.mrb[32].mxu0 %vm572_vm3, %v4876_v13  ;;  %v3553_v13 = vld [vmem:[%s6452_s3 + $0x1a0] sm:$0xff] }
 0x1a4   : > { %1813 = vmatprep.mubr.f32.mxu0 %v6463_v35 }
 0x1a7   : > { %3526 = vmatmul.mubr.msk.f32.gmra.mrb[34].mxu0 %vm572_vm3, %v4882_v14  ;;  %v3555_v14 = vld [vmem:[%s6452_s3 + $0x1b0] sm:$0xff] }
 0x1a8   : > { %1819 = vmatprep.mubr.f32.mxu0 %v6463_v35 }
 0x1ab   : > { %3527 = vmatmul.mubr.msk.f32.gmra.mrb[36].mxu0 %vm572_vm3, %v4888_v15  ;;  %v5353_v15 = vpop.f32.mrb[6].mxu1 }
 0x1ac   : > { %1825 = vmatprep.mubr.f32.mxu0 %v6463_v35  ;;  %v5355_v34 = vpop.f32.mrb[7].mxu1 }
 0x1ad   : > { %v5369_v42 = vpop.f32.mrb[8].mxu1 }
 0x1af   : > { %3528 = vmatmul.mubr.msk.f32.gmra.mrb[38].mxu0 %vm572_vm3, %v4894_v16  ;;  %v3899_v16 = vpack.c.bf16 %v3555_v14, %v3553_v13 }
 0x1b0   : > { %1831 = vmatprep.mubr.f32.mxu0 %v6463_v35 }
 0x1b1   : > { %3900 = vmatpush1.bf16.msra.mxu1 %v3899_v16 }
 0x1b2   : > { %3902 = vmatprep.subr.bf16.mxu1 %v3901_v39  ;;  %v6462_v39 = vsub.s32 0, %v5467_v38 }
 0x1b3   : > { %3529 = vmatmul.mubr.msk.f32.gmra.mrb[40].mxu0 %vm572_vm3, %v5040_v43  ;;  %v3903_v43 = vpack.c.bf16 %v3559_v41, %v3557_v40  ;;  %v1904_v40 = vld [vmem:[%s6451_s2] sm:$0x3]  ;;  %v6465_v41 = vsub.s32 1, %v5467_v38 }
 0x1b4   : > { %1837 = vmatprep.mubr.f32.mxu0 %v6463_v35  ;;  %v5477_v46 = vrot.slane %v1904_v40, %v6462_v39 }
 0x1b5   : > { %3904 = vmatpush1.bf16.msra.mxu1 %v3903_v43  ;;  %v5482_v49 = vrot.slane %v1904_v40, %v6465_v41 }
 0x1b6   : > { %3906 = vmatprep.subr.bf16.mxu1 %v3905_v47 }
 0x1b7   : > { %3530 = vmatmul.mubr.msk.f32.gmra.mrb[42].mxu0 %vm572_vm3, %v5049_v44  ;;  %v5371_v44 = vpop.f32.mrb[9].mxu1 }
 0x1b8   : > { %1843 = vmatprep.mubr.f32.mxu0 %v6463_v35  ;;  %v5385_v50 = vpop.f32.mrb[10].mxu1 }
 0x1b9   : > { %v5387_v52 = vpop.f32.mrb[11].mxu1  ;;  %3908 = vmatpush1.bf16.msra.mxu1 %v3907_v51 }
 0x1ba   : > { %v5389_v53 = vpop.f32.mrb[12].mxu1  ;;  %3910 = vmatprep.subr.bf16.mxu1 %v3909_v24 }
 0x1bb   : > { %3531 = vmatmul.mubr.msk.f32.gmra.mrb[44].mxu0 %vm572_vm3, %v553_v33  ;;  %v5391_v37 = vpop.f32.mrb[13].mxu1 }
 0x1bc   : > { %1849 = vmatprep.mubr.f32.mxu0 %v6463_v35  ;;  %v5393_v54 = vpop.f32.mrb[14].mxu1 }
 0x1bd   : > { %v5395_v55 = vpop.f32.mrb[15].mxu1 }
 0x1be   : > { %v5397_v56 = vpop.f32.mrb[16].mxu1 }
 0x1bf   : > { %3532 = vmatmul.mubr.msk.f32.gmra.mrb[46].mxu0 %vm572_vm3, %v554_v3  ;;  %v5399_v57 = vpop.f32.mrb[17].mxu1 }
 0x1c0   : > { %v5401_v58 = vpop.f32.mrb[18].mxu1 }
 0x1c1   : > { %v5403_v59 = vpop.f32.mrb[19].mxu1 }
 0x1c2   : > { %v5405_v60 = vpop.f32.mrb[20].mxu1 }
 0x1c3   : > { %v5407_v17 = vpop.f32.mrb[21].mxu1 }
 0x1c4   : > { %v5409_v18 = vpop.f32.mrb[22].mxu1 }
 0x1c5   : > { %v5411_v19 = vpop.f32.mrb[23].mxu1 }
 0x1c6   : > { %v5413_v20 = vpop.f32.mrb[24].mxu1 }
 0x1c7   : > { %v5415_v21 = vpop.f32.mrb[25].mxu1 }
 0x1c8   : > { %v5423_v25 = vpop.f32.mrb[26].mxu1 }
 0x1c9   : > { %v5425_v26 = vpop.f32.mrb[27].mxu1 }
 0x1ca   : > { %v5427_v27 = vpop.f32.mrb[28].mxu1 }
 0x1cb   : > { %v5429_v28 = vpop.f32.mrb[29].mxu1 }
 0x1cc   : > { %v5431_v29 = vpop.f32.mrb[30].mxu1 }
 0x1cd   : > { %v5433_v30 = vpop.f32.mrb[31].mxu1 }
 0x1ce   : > { %v5435_v31 = vpop.f32.mrb[32].mxu1 }
 0x1cf   : > { %v5437_v32 = vpop.f32.mrb[33].mxu1 }
 0x1d0   : > { %v5439_v33 = vpop.f32.mrb[34].mxu1 }
 0x1d1   : > { %v5441_v1 = vpop.f32.mrb[35].mxu1 }
 0x1d2   : > { %v5443_v2 = vpop.f32.mrb[36].mxu1 }
 0x1d3   : > { %v5445_v3 = vpop.f32.mrb[37].mxu1 }
 0x1d4   : > { %v5447_v4 = vpop.f32.mrb[38].mxu1 }
 0x1d5   : > { %v5449_v5 = vpop.f32.mrb[39].mxu1 }
 0x1d6   : > { %v5451_v6 = vpop.f32.mrb[40].mxu1 }
 0x1d7   : > { %v5453_v7 = vpop.f32.mrb[41].mxu1 }
 0x1d8   : > { %v5455_v10 = vpop.f32.mrb[42].mxu1 }
 0x1d9   : > { %v5457_v11 = vpop.f32.mrb[43].mxu1 }
 0x1da   : > { %v5459_v12 = vpop.f32.mrb[44].mxu1 }
 0x1db   : > { %v5461_v13 = vpop.f32.mrb[45].mxu1 }
 0x1dc   : > { %v5463_v14 = vpop.f32.mrb[46].mxu1 }
 0x1dd   : > { %v5465_v16 = vpop.f32.mrb[47].mxu1 }
 0x1de   : > { %6474 = vst [vmem:[#allocation6_spill] sm:$0xff] %v5465_v16 }
 0x236   : > { %v1713_v43 = vpop.f32.mrb[0].mxu0 }
 0x237   : > { %v4137_v45 = vadd.f32 %v1713_v43, %v5310_v61  ;;  %v1715_v47 = vpop.f32.mrb[1].mxu0 }
 0x238   : > { %v4138_v48 = vadd.f32 %v1715_v47, %v5312_v62 }
 0x239   : > { %v1916_v22 = vadd.f32 %v4137_v45, %v5477_v46 }
 0x23a   : > { %v1719_v51 = vpop.f32.mrb[2].mxu0  ;;  %v1917_v36 = vadd.f32 %v4138_v48, %v5482_v49 }
 0x23b   : > { %v4139_v23 = vadd.f32 %v1719_v51, %v5317_v63  ;;  %v1721_v24 = vpop.f32.mrb[3].mxu0  ;;  %v1964_v62 = vmax.f32 %v1916_v22, 0.0 }
 0x23c   : > { %v4140_v61 = vadd.f32 %v1721_v24, %v5319_v0  ;;  %v1965_v38 = vmax.f32 %v1917_v36, 0.0 }
 0x23d   : > { %v1918_v43 = vadd.f32 %v4139_v23, %v5477_v46 }
 0x23e   : > { %v1919_v39 = vadd.f32 %v4140_v61, %v5482_v49  ;;  %v1725_v35 = vpop.f32.mrb[4].mxu0 }
 0x23f   : > { %v1966_v47 = vmax.f32 %v1918_v43, 0.0  ;;  %v4141_v40 = vadd.f32 %v1725_v35, %v5336_v8  ;;  %v1727_v41 = vpop.f32.mrb[5].mxu0 }
 0x240   : > { %v1967_v16 = vmax.f32 %v1919_v39, 0.0  ;;  %v4142_v45 = vadd.f32 %v1727_v41, %v5338_v9 }
 0x241   : > { %v5492_v63 = vmax.f32 %v1964_v62, %v1966_v47  ;;  %v1920_v0 = vadd.f32 %v4141_v40, %v5477_v46  ;;  %v2048_v47 = vld [vmem:[%s6452_s3] sm:$0xff] }
 0x242   : > { %v5494_v51 = vmax.f32 %v1965_v38, %v1967_v16  ;;  %v1731_v48 = vpop.f32.mrb[6].mxu0  ;;  %v1921_v35 = vadd.f32 %v4142_v45, %v5482_v49  ;;  %v2053_v45 = vld [vmem:[%s6452_s3 + $0x28] sm:$0xff] }
 0x243   : > { %v4143_v23 = vadd.f32 %v1731_v48, %v5353_v15  ;;  %v1733_v24 = vpop.f32.mrb[7].mxu0  ;;  %v1968_v16 = vmax.f32 %v1920_v0, 0.0 }
 0x244   : > { %v2036_v22 = vmax.f32 %v5492_v63, %v5494_v51  ;;  %v4144_v8 = vadd.f32 %v1733_v24, %v5355_v34  ;;  %v1969_v43 = vmax.f32 %v1921_v35, 0.0  ;;  %v2050_v34 = vld [vmem:[%s6452_s3 + $0x10] sm:$0xff]  ;;  %v3573_v63 = vld [vmem:[%s6452_s3 + $0x240] sm:$0xff] }
 0x245   : > { %v1922_v39 = vadd.f32 %v4143_v23, %v5477_v46  ;;  %v3911_v35 = vpack.c.bf16 %v2050_v34, %v2048_v47  ;;  %v3575_v51 = vld [vmem:[%s6452_s3 + $0x250] sm:$0xff] }
 0x246   : > { %v1923_v9 = vadd.f32 %v4144_v8, %v5482_v49  ;;  %v1737_v41 = vpop.f32.mrb[8].mxu0 }
 0x247   : > { %v1970_v38 = vmax.f32 %v1922_v39, 0.0  ;;  %v4145_v36 = vadd.f32 %v1737_v41, %v5369_v42  ;;  %v1739_v61 = vpop.f32.mrb[9].mxu0  ;;  %v2055_v42 = vld [vmem:[%s6452_s3 + $0x38] sm:$0xff] }
 0x248   : > { %v1971_v15 = vmax.f32 %v1923_v9, 0.0  ;;  %v4146_v62 = vadd.f32 %v1739_v61, %v5371_v44  ;;  %v3913_v41 = vpack.c.bf16 %v2055_v42, %v2053_v45  ;;  %v2059_v61 = vld [vmem:[%s6452_s3 + $0x58] sm:$0xff] }
 0x249   : > { %v2014_v40 = vmax.f32 %v1968_v16, %v1970_v38  ;;  %v1924_v44 = vadd.f32 %v4145_v36, %v5477_v46  ;;  %v2052_v16 = vld [vmem:[%s6452_s3 + $0x20] sm:$0xff]  ;;  %v2054_v38 = vld [vmem:[%s6452_s3 + $0x30] sm:$0xff] }
 0x24a   : > { %v2015_v48 = vmax.f32 %v1969_v43, %v1971_v15  ;;  %v1743_v0 = vpop.f32.mrb[10].mxu0  ;;  %v1925_v39 = vadd.f32 %v4146_v62, %v5482_v49  ;;  %v3915_v45 = vpack.c.bf16 %v2054_v38, %v2052_v16 }
 0x24b   : > { %v4147_v23 = vadd.f32 %v1743_v0, %v5385_v50  ;;  %v1745_v24 = vpop.f32.mrb[11].mxu0  ;;  %v2057_v50 = vld [vmem:[%s6452_s3 + $0x48] sm:$0xff]  ;;  %v1972_v15 = vmax.f32 %v1924_v44, 0.0  ;;  %v2058_v44 = vld [vmem:[%s6452_s3 + $0x50] sm:$0xff] }
 0x24c   : > { %v5520_v8 = vmax.f32 %v2014_v40, %v2015_v48  ;;  %v4148_v9 = vadd.f32 %v1745_v24, %v5387_v52  ;;  %v6476_v40 = vmov 0.0   ;;  %v1973_v42 = vmax.f32 %v1925_v39, 0.0  ;;  %v2056_v24 = vld [vmem:[%s6452_s3 + $0x40] sm:$0xff]  ;;  %v2063_v39 = vld [vmem:[%s6452_s3 + $0x78] sm:$0xff] }
 0x24d   : > { %v1926_v36 = vadd.f32 %v4147_v23, %v5477_v46  ;;  %v3917_v23 = vpack.c.bf16 %v2059_v61, %v2057_v50 }
 0x24e   : > { %v1927_v52 = vadd.f32 %v4148_v9, %v5482_v49  ;;  %v1749_v43 = vpop.f32.mrb[12].mxu0  ;;  %2178 = vmatmul.mubr.f32.vlgmr.msra.gmra.mrb[48].mxu1 %v5520_v8 }
 0x24f   : > { %v1974_v62 = vmax.f32 %v1926_v36, 0.0  ;;  %v4149_v47 = vadd.f32 %v1749_v43, %v5389_v53  ;;  %v1751_v34 = vpop.f32.mrb[13].mxu0  ;;  %2183 = vmatprep.mubr.f32.mxu1 %v6476_v40  ;;  %3912 = vmatpush1.bf16.msra.mxu1 %v3911_v35  ;;  %v2061_v35 = vld [vmem:[%s6452_s3 + $0x68] sm:$0xff]  ;;  %v3919_v36 = vpack.c.bf16 %v2058_v44, %v2056_v24 }
 0x250   : > { %v1975_v48 = vmax.f32 %v1927_v52, 0.0  ;;  %v4150_v0 = vadd.f32 %v1751_v34, %v5391_v37  ;;  %3914 = vmatprep.subr.bf16.mxu1 %v3913_v41  ;;  %v3921_v43 = vpack.c.bf16 %v2063_v39, %v2061_v35 }
 0x251   : > { %v2016_v53 = vmax.f32 %v1972_v15, %v1974_v62  ;;  %v1928_v41 = vadd.f32 %v4149_v47, %v5477_v46  ;;  %v2060_v15 = vld [vmem:[%s6452_s3 + $0x60] sm:$0xff]  ;;  %v2062_v62 = vld [vmem:[%s6452_s3 + $0x70] sm:$0xff]  ;;  %v2065_v47 = vld [vmem:[%s6452_s3 + $0x88] sm:$0xff] }
 0x252   : > { %v2017_v37 = vmax.f32 %v1973_v42, %v1975_v48  ;;  %v1755_v9 = vpop.f32.mrb[14].mxu0  ;;  %v1929_v50 = vadd.f32 %v4150_v0, %v5482_v49  ;;  %v3923_v24 = vpack.c.bf16 %v2062_v62, %v2060_v15 }
 0x253   : > { %v4151_v16 = vadd.f32 %v1755_v9, %v5393_v54  ;;  %v1757_v38 = vpop.f32.mrb[15].mxu0  ;;  %3916 = vmatpush1.bf16.msra.mxu1 %v3915_v45  ;;  %v1976_v42 = vmax.f32 %v1928_v41, 0.0  ;;  %v2066_v9 = vld [vmem:[%s6452_s3 + $0x90] sm:$0xff]  ;;  %v2069_v41 = vld [vmem:[%s6452_s3 + $0xa8] sm:$0xff] }
 0x254   : > { %v4152_v61 = vadd.f32 %v1757_v38, %v5395_v55  ;;  %v5558_v52 = vmax.f32 %v2016_v53, %v2017_v37  ;;  %3918 = vmatprep.subr.bf16.mxu1 %v3917_v23  ;;  %v2067_v55 = vld [vmem:[%s6452_s3 + $0x98] sm:$0xff]  ;;  %v1977_v44 = vmax.f32 %v1929_v50, 0.0  ;;  %v2064_v37 = vld [vmem:[%s6452_s3 + $0x80] sm:$0xff] }
 0x255   : > { %v1930_v54 = vadd.f32 %v4151_v16, %v5477_v46  ;;  %v3925_v39 = vpack.c.bf16 %v2067_v55, %v2065_v47  ;;  %v2071_v16 = vld [vmem:[%s6452_s3 + $0xb8] sm:$0xff]  ;;  %v2068_v55 = vld [vmem:[%s6452_s3 + $0xa0] sm:$0xff] }
 0x256   : > { %v1931_v34 = vadd.f32 %v4152_v61, %v5482_v49  ;;  %v1761_v45 = vpop.f32.mrb[16].mxu0  ;;  %2184 = vmatmul.mubr.f32.gmra.mrb[50].mxu1 %v5558_v52  ;;  %v3929_v47 = vpack.c.bf16 %v2071_v16, %v2069_v41  ;;  %v2074_v41 = vld [vmem:[%s6452_s3 + $0xd0] sm:$0xff]  ;;  %v2077_v16 = vld [vmem:[%s6452_s3 + $0xe8] sm:$0xff] }
 0x257   : > { %v1978_v48 = vmax.f32 %v1930_v54, 0.0  ;;  %v4153_v0 = vadd.f32 %v1761_v45, %v5397_v56  ;;  %v1763_v23 = vpop.f32.mrb[17].mxu0  ;;  %2189 = vmatprep.mubr.f32.mxu1 %v6476_v40  ;;  %3920 = vmatpush1.bf16.msra.mxu1 %v3919_v36  ;;  %v2073_v45 = vld [vmem:[%s6452_s3 + $0xc8] sm:$0xff] }
 0x258   : > { %v1979_v53 = vmax.f32 %v1931_v34, 0.0  ;;  %v4154_v35 = vadd.f32 %v1763_v23, %v5399_v57  ;;  %3922 = vmatprep.subr.bf16.mxu1 %v3921_v43  ;;  %v3927_v43 = vpack.c.bf16 %v2066_v9, %v2064_v37  ;;  %v2070_v34 = vld [vmem:[%s6452_s3 + $0xb0] sm:$0xff] }
 0x259   : > { %v2018_v56 = vmax.f32 %v1976_v42, %v1978_v48  ;;  %v1932_v36 = vadd.f32 %v4153_v0, %v5477_v46 }
 0x25a   : > { %v2019_v57 = vmax.f32 %v1977_v44, %v1979_v53  ;;  %v1767_v38 = vpop.f32.mrb[18].mxu0  ;;  %v1933_v62 = vadd.f32 %v4154_v35, %v5482_v49  ;;  %v3931_v53 = vpack.c.bf16 %v2070_v34, %v2068_v55  ;;  %v2076_v34 = vld [vmem:[%s6452_s3 + $0xe0] sm:$0xff] }
 0x25b   : > { %v4155_v50 = vadd.f32 %v1767_v38, %v5401_v58  ;;  %v1769_v61 = vpop.f32.mrb[19].mxu0  ;;  %3924 = vmatpush1.bf16.msra.mxu1 %v3923_v24  ;;  %v1980_v0 = vmax.f32 %v1932_v36, 0.0 }
 0x25c   : > { %v5592_v15 = vmax.f32 %v2018_v56, %v2019_v57  ;;  %v4156_v54 = vadd.f32 %v1769_v61, %v5403_v59  ;;  %3926 = vmatprep.subr.bf16.mxu1 %v3925_v39  ;;  %v2075_v59 = vld [vmem:[%s6452_s3 + $0xd8] sm:$0xff]  ;;  %v1981_v35 = vmax.f32 %v1933_v62, 0.0  ;;  %v2072_v56 = vld [vmem:[%s6452_s3 + $0xc0] sm:$0xff] }
 0x25d   : > { %v1934_v58 = vadd.f32 %v4155_v50, %v5477_v46  ;;  %v3933_v9 = vpack.c.bf16 %v2075_v59, %v2073_v45  ;;  %v2079_v57 = vld [vmem:[%s6452_s3 + $0xf8] sm:$0xff]  ;;  %v3566_v45 = vld [vmem:[%s6452_s3 + $0x208] sm:$0xff] }
 0x25e   : > { %v1935_v42 = vadd.f32 %v4156_v54, %v5482_v49  ;;  %v1773_v48 = vpop.f32.mrb[20].mxu0  ;;  %2190 = vmatmul.mubr.f32.gmra.mrb[52].mxu1 %v5592_v15  ;;  %v3937_v55 = vpack.c.bf16 %v2079_v57, %v2077_v16 }
 0x25f   : > { %v1982_v23 = vmax.f32 %v1934_v58, 0.0  ;;  %v4157_v24 = vadd.f32 %v1773_v48, %v5405_v60  ;;  %v1775_v44 = vpop.f32.mrb[21].mxu0  ;;  %2195 = vmatprep.mubr.f32.mxu1 %v6476_v40  ;;  %3928 = vmatpush1.bf16.msra.mxu1 %v3927_v43  ;;  %v3935_v43 = vpack.c.bf16 %v2074_v41, %v2072_v56  ;;  %v2078_v58 = vld [vmem:[%s6452_s3 + $0xf0] sm:$0xff] }
 0x260   : > { %v1983_v39 = vmax.f32 %v1935_v42, 0.0  ;;  %v4158_v37 = vadd.f32 %v1775_v44, %v5407_v17  ;;  %3930 = vmatprep.subr.bf16.mxu1 %v3929_v47  ;;  %v3939_v44 = vpack.c.bf16 %v2078_v58, %v2076_v34 }
 0x261   : > { %v2020_v60 = vmax.f32 %v1980_v0, %v1982_v23  ;;  %v1936_v36 = vadd.f32 %v4157_v24, %v5477_v46 }
 0x262   : > { %v2021_v17 = vmax.f32 %v1981_v35, %v1983_v39  ;;  %v1779_v38 = vpop.f32.mrb[22].mxu0  ;;  %v1937_v54 = vadd.f32 %v4158_v37, %v5482_v49 }
 0x263   : > { %v4159_v50 = vadd.f32 %v1779_v38, %v5409_v18  ;;  %v1781_v61 = vpop.f32.mrb[23].mxu0  ;;  %3932 = vmatpush1.bf16.msra.mxu1 %v3931_v53  ;;  %v1984_v48 = vmax.f32 %v1936_v36, 0.0 }
 0x264   : > { %v5628_v62 = vmax.f32 %v2020_v60, %v2021_v17  ;;  %v4160_v47 = vadd.f32 %v1781_v61, %v5411_v19  ;;  %3934 = vmatprep.subr.bf16.mxu1 %v3933_v9  ;;  %v3568_v19 = vld [vmem:[%s6452_s3 + $0x218] sm:$0xff]  ;;  %v1985_v53 = vmax.f32 %v1937_v54, 0.0 }
 0x265   : > { %v1938_v18 = vadd.f32 %v4159_v50, %v5477_v46  ;;  %v3941_v37 = vpack.c.bf16 %v3568_v19, %v3566_v45 }
 0x266   : > { %v1939_v59 = vadd.f32 %v4160_v47, %v5482_v49  ;;  %v1785_v42 = vpop.f32.mrb[24].mxu0  ;;  %2196 = vmatmul.mubr.f32.gmra.mrb[54].mxu1 %v5628_v62 }
 0x267   : > { %v1986_v0 = vmax.f32 %v1938_v18, 0.0  ;;  %v4161_v23 = vadd.f32 %v1785_v42, %v5413_v20  ;;  %v1787_v24 = vpop.f32.mrb[25].mxu0  ;;  %2201 = vmatprep.mubr.f32.mxu1 %v6476_v40  ;;  %3936 = vmatpush1.bf16.msra.mxu1 %v3935_v43 }
 0x268   : > { %v1987_v35 = vmax.f32 %v1939_v59, 0.0  ;;  %v4162_v39 = vadd.f32 %v1787_v24, %v5415_v21  ;;  %3938 = vmatprep.subr.bf16.mxu1 %v3937_v55 }
 0x269   : > { %v2022_v9 = vmax.f32 %v1984_v48, %v1986_v0  ;;  %v1940_v60 = vadd.f32 %v4161_v23, %v5477_v46 }
 0x26a   : > { %v2023_v56 = vmax.f32 %v1985_v53, %v1987_v35  ;;  %v1791_v41 = vpop.f32.mrb[26].mxu0  ;;  %v1941_v17 = vadd.f32 %v4162_v39, %v5482_v49 }
 0x26b   : > { %v4163_v16 = vadd.f32 %v1791_v41, %v5423_v25  ;;  %v1793_v57 = vpop.f32.mrb[27].mxu0  ;;  %3940 = vmatpush1.bf16.msra.mxu1 %v3939_v44  ;;  %v1988_v61 = vmax.f32 %v1940_v60, 0.0 }
 0x26c   : > { %v5652_v20 = vmax.f32 %v2022_v9, %v2023_v56  ;;  %v4164_v38 = vadd.f32 %v1793_v57, %v5425_v26  ;;  %3942 = vmatprep.subr.bf16.mxu1 %v3941_v37  ;;  %v1989_v47 = vmax.f32 %v1941_v17, 0.0 }
 0x26d   : > { %v1942_v21 = vadd.f32 %v4163_v16, %v5477_v46 }
 0x26e   : > { %v1943_v36 = vadd.f32 %v4164_v38, %v5482_v49  ;;  %v1797_v50 = vpop.f32.mrb[28].mxu0  ;;  %2202 = vmatmul.mubr.f32.gmra.mrb[56].mxu1 %v5652_v20 }
 0x26f   : > { %v1990_v43 = vmax.f32 %v1942_v21, 0.0  ;;  %v4165_v25 = vadd.f32 %v1797_v50, %v5427_v27  ;;  %v1799_v54 = vpop.f32.mrb[29].mxu0  ;;  %2207 = vmatprep.mubr.f32.mxu1 %v6476_v40 }
 0x270   : > { %v1991_v55 = vmax.f32 %v1943_v36, 0.0  ;;  %v4166_v34 = vadd.f32 %v1799_v54, %v5429_v28 }
 0x271   : > { %v2024_v26 = vmax.f32 %v1988_v61, %v1990_v43  ;;  %v1944_v45 = vadd.f32 %v4165_v25, %v5477_v46 }
 0x272   : > { %v2025_v58 = vmax.f32 %v1989_v47, %v1991_v55  ;;  %v1803_v18 = vpop.f32.mrb[30].mxu0  ;;  %v1945_v48 = vadd.f32 %v4166_v34, %v5482_v49 }
 0x273   : > { %v4167_v19 = vadd.f32 %v1803_v18, %v5431_v29  ;;  %v1805_v59 = vpop.f32.mrb[31].mxu0  ;;  %v1992_v28 = vmax.f32 %v1944_v45, 0.0 }
 0x274   : > { %v5664_v42 = vmax.f32 %v2024_v26, %v2025_v58  ;;  %v4168_v27 = vadd.f32 %v1805_v59, %v5433_v30  ;;  %v1993_v29 = vmax.f32 %v1945_v48, 0.0  ;;  %v3572_v48 = vld [vmem:[%s6452_s3 + $0x238] sm:$0xff] }
 0x275   : > { %v1946_v0 = vadd.f32 %v4167_v19, %v5477_v46  ;;  %v3565_v19 = vld [vmem:[%s6452_s3 + $0x200] sm:$0xff] }
 0x276   : > { %v1947_v23 = vadd.f32 %v4168_v27, %v5482_v49  ;;  %v1809_v24 = vpop.f32.mrb[32].mxu0  ;;  %2208 = vmatmul.mubr.f32.gmra.mrb[58].mxu1 %v5664_v42 }
 0x277   : > { %v1994_v44 = vmax.f32 %v1946_v0, 0.0  ;;  %v4169_v53 = vadd.f32 %v1809_v24, %v5435_v31  ;;  %v1811_v35 = vpop.f32.mrb[33].mxu0  ;;  %2213 = vmatprep.mubr.f32.mxu1 %v6476_v40 }
 0x278   : > { %v1995_v39 = vmax.f32 %v1947_v23, 0.0  ;;  %v4170_v37 = vadd.f32 %v1811_v35, %v5437_v32 }
 0x279   : > { %v2026_v9 = vmax.f32 %v1992_v28, %v1994_v44  ;;  %v1948_v41 = vadd.f32 %v4169_v53, %v5477_v46 }
 0x27a   : > { %v2027_v30 = vmax.f32 %v1993_v29, %v1995_v39  ;;  %v1815_v56 = vpop.f32.mrb[34].mxu0  ;;  %v1949_v17 = vadd.f32 %v4170_v37, %v5482_v49  ;;  %v3569_v37 = vld [vmem:[%s6452_s3 + $0x220] sm:$0xff] }
 0x27b   : > { %v4171_v60 = vadd.f32 %v1815_v56, %v5439_v33  ;;  %v1817_v16 = vpop.f32.mrb[35].mxu0  ;;  %v1996_v32 = vmax.f32 %v1948_v41, 0.0  ;;  %v3576_v56 = vld [vmem:[%s6452_s3 + $0x258] sm:$0xff] }
 0x27c   : > { %v5676_v57 = vmax.f32 %v2026_v9, %v2027_v30  ;;  %v4172_v31 = vadd.f32 %v1817_v16, %v5441_v1  ;;  %v1997_v33 = vmax.f32 %v1949_v17, 0.0  ;;  %v3571_v9 = vld [vmem:[%s6452_s3 + $0x230] sm:$0xff] }
 0x27d   : > { %v1950_v38 = vadd.f32 %v4171_v60, %v5477_v46 }
 0x27e   : > { %v1951_v21 = vadd.f32 %v4172_v31, %v5482_v49  ;;  %v1821_v36 = vpop.f32.mrb[36].mxu0  ;;  %2214 = vmatmul.mubr.f32.gmra.mrb[60].mxu1 %v5676_v57  ;;  %v3947_v31 = vpack.c.bf16 %v3571_v9, %v3569_v37 }
 0x27f   : > { %v1998_v50 = vmax.f32 %v1950_v38, 0.0  ;;  %v4173_v61 = vadd.f32 %v1821_v36, %v5443_v2  ;;  %v1823_v43 = vpop.f32.mrb[37].mxu0  ;;  %2219 = vmatprep.mubr.f32.mxu1 %v6476_v40 }
 0x280   : > { %v1999_v25 = vmax.f32 %v1951_v21, 0.0  ;;  %v4174_v54 = vadd.f32 %v1823_v43, %v5445_v3  ;;  %v3567_v3 = vld [vmem:[%s6452_s3 + $0x210] sm:$0xff] }
 0x281   : > { %v2028_v47 = vmax.f32 %v1996_v32, %v1998_v50  ;;  %v1952_v34 = vadd.f32 %v4173_v61, %v5477_v46  ;;  %v3943_v44 = vpack.c.bf16 %v3567_v3, %v3565_v19  ;;  %v3578_v32 = vld [vmem:[%s6452_s3 + $0x268] sm:$0xff] }
 0x282   : > { %v2029_v1 = vmax.f32 %v1997_v33, %v1999_v25  ;;  %v1827_v55 = vpop.f32.mrb[38].mxu0  ;;  %v1953_v45 = vadd.f32 %v4174_v54, %v5482_v49 }
 0x283   : > { %v4175_v26 = vadd.f32 %v1827_v55, %v5447_v4  ;;  %v1829_v58 = vpop.f32.mrb[39].mxu0  ;;  %v3570_v4 = vld [vmem:[%s6452_s3 + $0x228] sm:$0xff]  ;;  %v2000_v0 = vmax.f32 %v1952_v34, 0.0 }
 0x284   : > { %v5688_v18 = vmax.f32 %v2028_v47, %v2029_v1  ;;  %v4176_v2 = vadd.f32 %v1829_v58, %v5449_v5  ;;  %v2001_v53 = vmax.f32 %v1953_v45, 0.0  ;;  %v3945_v39 = vpack.c.bf16 %v3572_v48, %v3570_v4  ;;  %v3577_v58 = vld [vmem:[%s6452_s3 + $0x260] sm:$0xff]  ;;  %v3582_v45 = vld [vmem:[%s6452_s3 + $0x288] sm:$0xff] }
 0x285   : > { %v1954_v59 = vadd.f32 %v4175_v26, %v5477_v46  ;;  %v3951_v47 = vpack.c.bf16 %v3575_v51, %v3573_v63  ;;  %v3594_v63 = vld [vmem:[%s6452_s3 + $0x2e8] sm:$0xff]  ;;  %v3596_v51 = vld [vmem:[%s6452_s3 + $0x2f8] sm:$0xff] }
 0x286   : > { %v1955_v5 = vadd.f32 %v4176_v2, %v5482_v49  ;;  %v1833_v27 = vpop.f32.mrb[40].mxu0  ;;  %2220 = vmatmul.mubr.f32.gmra.mrb[62].mxu1 %v5688_v18  ;;  %v3584_v2 = vld [vmem:[%s6452_s3 + $0x298] sm:$0xff] }
 0x287   : > { %v2002_v23 = vmax.f32 %v1954_v59, 0.0  ;;  %v4177_v24 = vadd.f32 %v1833_v27, %v5451_v6  ;;  %v1835_v28 = vpop.f32.mrb[41].mxu0  ;;  %2290 = vmatprep.mubr.f32.mxu1 %v6476_v40  ;;  %v3574_v6 = vld [vmem:[%s6452_s3 + $0x248] sm:$0xff]  ;;  %v6477_v27 = vld [vmem:[#allocation6_spill] sm:$0xff] }
 0x288   : > { %v2003_v35 = vmax.f32 %v1955_v5, 0.0  ;;  %v4178_v29 = vadd.f32 %v1835_v28, %v5453_v7  ;;  %v3949_v36 = vpack.c.bf16 %v3576_v56, %v3574_v6  ;;  %v3583_v28 = vld [vmem:[%s6452_s3 + $0x290] sm:$0xff]  ;;  %v3585_v56 = vld [vmem:[%s6452_s3 + $0x2a0] sm:$0xff] }
 0x289   : > { %v2030_v30 = vmax.f32 %v2000_v0, %v2002_v23  ;;  %v1956_v60 = vadd.f32 %v4177_v24, %v5477_v46  ;;  %v3957_v23 = vpack.c.bf16 %v3584_v2, %v3582_v45  ;;  %v3581_v24 = vld [vmem:[%s6452_s3 + $0x280] sm:$0xff]  ;;  %v3608_v45 = vld [vmem:[%s6452_s3 + $0x358] sm:$0xff] }
 0x28a   : > { %v2031_v41 = vmax.f32 %v2001_v53, %v2003_v35  ;;  %v1839_v7 = vpop.f32.mrb[42].mxu0  ;;  %2291 = vmatmul.mubr.f32.vlgmr.msra.gmra.mrb[48].mxu1 %v2036_v22  ;;  %v1957_v38 = vadd.f32 %v4178_v29, %v5482_v49  ;;  %v3586_v53 = vld [vmem:[%s6452_s3 + $0x2a8] sm:$0xff]  ;;  %v3588_v35 = vld [vmem:[%s6452_s3 + $0x2b8] sm:$0xff]  ;;  %v3959_v9 = vpack.c.bf16 %v3583_v28, %v3581_v24 }
 0x28b   : > { %v4179_v16 = vadd.f32 %v1839_v7, %v5455_v10  ;;  %v1841_v17 = vpop.f32.mrb[43].mxu0  ;;  %3944 = vmatpush1.bf16.msra.mxu1 %v3943_v44  ;;  %2296 = vmatprep.mubr.f32.mxu1 %v6476_v40  ;;  %v2004_v43 = vmax.f32 %v1956_v60, 0.0  ;;  %v3961_v6 = vpack.c.bf16 %v3588_v35, %v3586_v53  ;;  %v3590_v7 = vld [vmem:[%s6452_s3 + $0x2c8] sm:$0xff]  ;;  %v3592_v60 = vld [vmem:[%s6452_s3 + $0x2d8] sm:$0xff]  ;;  %v3615_v53 = vld [vmem:[%s6452_s3 + $0x390] sm:$0xff] }
 0x28c   : > { %v4180_v21 = vadd.f32 %v1841_v17, %v5457_v11  ;;  %3946 = vmatprep.subr.bf16.mxu1 %v3945_v39  ;;  %v5736_v10 = vmax.f32 %v2030_v30, %v2031_v41  ;;  %v3580_v11 = vld [vmem:[%s6452_s3 + $0x278] sm:$0xff]  ;;  %v2005_v1 = vmax.f32 %v1957_v38, 0.0  ;;  %v3589_v38 = vld [vmem:[%s6452_s3 + $0x2c0] sm:$0xff]  ;;  %v3618_v35 = vld [vmem:[%s6452_s3 + $0x3a8] sm:$0xff] }
 0x28d   : > { %v1958_v22 = vadd.f32 %v4179_v16, %v5477_v46  ;;  %v3953_v26 = vpack.c.bf16 %v3580_v11, %v3578_v32  ;;  %v3969_v32 = vpack.c.bf16 %v3596_v51, %v3594_v63  ;;  %v3593_v11 = vld [vmem:[%s6452_s3 + $0x2e0] sm:$0xff]  ;;  %v3627_v51 = vld [vmem:[%s6452_s3 + $0x3f0] sm:$0xff] }
 0x28e   : > { %v1959_v50 = vadd.f32 %v4180_v21, %v5482_v49  ;;  %v1845_v61 = vpop.f32.mrb[44].mxu0  ;;  %2297 = vmatmul.mubr.f32.gmra.mrb[50].mxu1 %v5520_v8  ;;  %v3579_v8 = vld [vmem:[%s6452_s3 + $0x270] sm:$0xff]  ;;  %v3625_v63 = vld [vmem:[%s6452_s3 + $0x3e0] sm:$0xff] }
 0x28f   : > { %v2006_v33 = vmax.f32 %v1958_v22, 0.0  ;;  %v4181_v25 = vadd.f32 %v1845_v61, %v5459_v12  ;;  %v1847_v54 = vpop.f32.mrb[45].mxu0  ;;  %3948 = vmatpush1.bf16.msra.mxu1 %v3947_v31  ;;  %2302 = vmatprep.mubr.f32.mxu1 %v6476_v40  ;;  %v3955_v48 = vpack.c.bf16 %v3579_v8, %v3577_v58  ;;  %v3965_v31 = vpack.c.bf16 %v3592_v60, %v3590_v7  ;;  %v3591_v21 = vld [vmem:[%s6452_s3 + $0x2d0] sm:$0xff]  ;;  %v3598_v61 = vld [vmem:[%s6452_s3 + $0x308] sm:$0xff]  ;;  %v3601_v58 = vld [vmem:[%s6452_s3 + $0x320] sm:$0xff] }
 0x290   : > { %v2007_v55 = vmax.f32 %v1959_v50, 0.0  ;;  %v4182_v34 = vadd.f32 %v1847_v54, %v5461_v13  ;;  %3950 = vmatprep.subr.bf16.mxu1 %v3949_v36  ;;  %v3967_v22 = vpack.c.bf16 %v3591_v21, %v3589_v38  ;;  %v3595_v50 = vld [vmem:[%s6452_s3 + $0x2f0] sm:$0xff]  ;;  %v3597_v54 = vld [vmem:[%s6452_s3 + $0x300] sm:$0xff] }
 0x291   : > { %v2032_v12 = vmax.f32 %v2004_v43, %v2006_v33  ;;  %v1960_v3 = vadd.f32 %v4181_v25, %v5477_v46  ;;  %v3600_v43 = vld [vmem:[%s6452_s3 + $0x318] sm:$0xff]  ;;  %v3971_v33 = vpack.c.bf16 %v3595_v50, %v3593_v11  ;;  %v3603_v8 = vld [vmem:[%s6452_s3 + $0x330] sm:$0xff]  ;;  %v3621_v7 = vld [vmem:[%s6452_s3 + $0x3c0] sm:$0xff]  ;;  %v4003_v11 = vpack.c.bf16 %v3627_v51, %v3625_v63 }
 0x292   : > { %v2033_v13 = vmax.f32 %v2005_v1, %v2007_v55  ;;  %v1851_v19 = vpop.f32.mrb[46].mxu0  ;;  %2303 = vmatmul.mubr.f32.gmra.mrb[52].mxu1 %v5558_v52  ;;  %v1961_v5 = vadd.f32 %v4182_v34, %v5482_v49  ;;  %v3973_v25 = vpack.c.bf16 %v3600_v43, %v3598_v61  ;;  %v3602_v1 = vld [vmem:[%s6452_s3 + $0x328] sm:$0xff]  ;;  %v3604_v55 = vld [vmem:[%s6452_s3 + $0x338] sm:$0xff]  ;;  %v3979_v2 = vpack.c.bf16 %v3603_v8, %v3601_v58  ;;  %v3623_v60 = vld [vmem:[%s6452_s3 + $0x3d0] sm:$0xff] }
 0x293   : > { %v4183_v59 = vadd.f32 %v1851_v19, %v5463_v14  ;;  %v1853_v4 = vpop.f32.mrb[47].mxu0  ;;  %3952 = vmatpush1.bf16.msra.mxu1 %v3951_v47  ;;  %2308 = vmatprep.mubr.f32.mxu1 %v6476_v40  ;;  %v2008_v39 = vmax.f32 %v1960_v3, 0.0  ;;  %v3599_v47 = vld [vmem:[%s6452_s3 + $0x310] sm:$0xff]  ;;  %v3605_v19 = vld [vmem:[%s6452_s3 + $0x340] sm:$0xff]  ;;  %v3999_v38 = vpack.c.bf16 %v3623_v60, %v3621_v7 }
 0x294   : > { %v4184_v0 = vadd.f32 %v1853_v4, %v6477_v27  ;;  %3954 = vmatprep.subr.bf16.mxu1 %v3953_v26  ;;  %v5774_v14 = vmax.f32 %v2032_v12, %v2033_v13  ;;  %v2009_v30 = vmax.f32 %v1961_v5, 0.0  ;;  %v3975_v34 = vpack.c.bf16 %v3599_v47, %v3597_v54  ;;  %v3606_v12 = vld [vmem:[%s6452_s3 + $0x348] sm:$0xff]  ;;  %v3607_v3 = vld [vmem:[%s6452_s3 + $0x350] sm:$0xff]  ;;  %v3609_v5 = vld [vmem:[%s6452_s3 + $0x360] sm:$0xff] }
 0x295   : > { %v1962_v44 = vadd.f32 %v4183_v59, %v5477_v46  ;;  %v3977_v26 = vpack.c.bf16 %v3604_v55, %v3602_v1  ;;  %v3981_v13 = vpack.c.bf16 %v3608_v45, %v3606_v12  ;;  %v3610_v59 = vld [vmem:[%s6452_s3 + $0x368] sm:$0xff]  ;;  %v3983_v4 = vpack.c.bf16 %v3607_v3, %v3605_v19  ;;  %v3611_v27 = vld [vmem:[%s6452_s3 + $0x370] sm:$0xff]  ;;  %v3629_v61 = vld [vmem:[%s6452_s3 + $0x400] sm:$0xff] }
 0x296   : > { %v1963_v29 = vadd.f32 %v4184_v0, %v5482_v49  ;;  %2309 = vmatmul.mubr.f32.gmra.mrb[54].mxu1 %v5592_v15  ;;  %v3587_v49 = vld [vmem:[%s6452_s3 + $0x2b0] sm:$0xff]  ;;  %v3614_v0 = vld [vmem:[%s6452_s3 + $0x388] sm:$0xff]  ;;  %v3987_v24 = vpack.c.bf16 %v3611_v27, %v3609_v5  ;;  %v3633_v1 = vld [vmem:[%s6452_s3 + $0x420] sm:$0xff] }
 0x297   : > { %v2010_v37 = vmax.f32 %v1962_v44, 0.0  ;;  %3956 = vmatpush1.bf16.msra.mxu1 %v3955_v48  ;;  %2314 = vmatprep.mubr.f32.mxu1 %v6476_v40  ;;  %v3963_v17 = vpack.c.bf16 %v3587_v49, %v3585_v56  ;;  %v3613_v44 = vld [vmem:[%s6452_s3 + $0x380] sm:$0xff]  ;;  %v3631_v43 = vld [vmem:[%s6452_s3 + $0x410] sm:$0xff] }
 0x298   : > { %v2011_v46 = vmax.f32 %v1963_v29, 0.0  ;;  %3958 = vmatprep.subr.bf16.mxu1 %v3957_v23  ;;  %v3616_v23 = vld [vmem:[%s6452_s3 + $0x398] sm:$0xff]  ;;  %v4007_v54 = vpack.c.bf16 %v3631_v43, %v3629_v61  ;;  %v3635_v55 = vld [vmem:[%s6452_s3 + $0x430] sm:$0xff]  ;;  %v3637_v12 = vld [vmem:[%s6452_s3 + $0x440] sm:$0xff] }
 0x299   : > { %v5792_v41 = vmax.f32 %v2008_v39, %v2010_v37  ;;  %v3989_v28 = vpack.c.bf16 %v3616_v23, %v3614_v0  ;;  %v3620_v29 = vld [vmem:[%s6452_s3 + $0x3b8] sm:$0xff]  ;;  %v3991_v39 = vpack.c.bf16 %v3615_v53, %v3613_v44  ;;  %v4011_v58 = vpack.c.bf16 %v3635_v55, %v3633_v1  ;;  %v3639_v45 = vld [vmem:[%s6452_s3 + $0x450] sm:$0xff]  ;;  %v3641_v3 = vld [vmem:[%s6452_s3 + $0x460] sm:$0xff] }
 0x29a   : > { %v5800_v16 = vmax.f32 %v2009_v30, %v2011_v46  ;;  %2315 = vmatmul.mubr.f32.gmra.mrb[56].mxu1 %v5628_v62  ;;  %v3993_v37 = vpack.c.bf16 %v3620_v29, %v3618_v35  ;;  %v3619_v30 = vld [vmem:[%s6452_s3 + $0x3b0] sm:$0xff]  ;;  %v3622_v46 = vld [vmem:[%s6452_s3 + $0x3c8] sm:$0xff]  ;;  %v3645_v27 = vld [vmem:[%s6452_s3 + $0x480] sm:$0xff] }
 0x29b   : > { %3960 = vmatpush1.bf16.msra.mxu1 %v3959_v9  ;;  %2320 = vmatprep.mubr.f32.mxu1 %v6476_v40  ;;  %v3617_v9 = vld [vmem:[%s6452_s3 + $0x3a0] sm:$0xff]  ;;  %v3647_v0 = vld [vmem:[%s6452_s3 + $0x490] sm:$0xff]  ;;  %v3650_v23 = vld [vmem:[%s6452_s3 + $0x4a8] sm:$0xff] }
 0x29c   : > { %3962 = vmatprep.subr.bf16.mxu1 %v3961_v6  ;;  %v2047_v36 = vmax.f32 %v5792_v41, %v5800_v16  ;;  %v3624_v6 = vld [vmem:[%s6452_s3 + $0x3d8] sm:$0xff]  ;;  %v3995_v56 = vpack.c.bf16 %v3619_v30, %v3617_v9  ;;  %v3649_v53 = vld [vmem:[%s6452_s3 + $0x4a0] sm:$0xff]  ;;  %v3651_v35 = vld [vmem:[%s6452_s3 + $0x4b0] sm:$0xff] }
 0x29d   : > { %v3997_v49 = vpack.c.bf16 %v3624_v6, %v3622_v46  ;;  %v3654_v29 = vld [vmem:[%s6452_s3 + $0x4c8] sm:$0xff]  ;;  %v3653_v30 = vld [vmem:[%s6452_s3 + $0x4c0] sm:$0xff]  ;;  %v3655_v46 = vld [vmem:[%s6452_s3 + $0x4d0] sm:$0xff] }
 0x29e   : > { %2321 = vmatmul.mubr.f32.gmra.mrb[58].mxu1 %v5652_v20  ;;  %v3658_v6 = vld [vmem:[%s6452_s3 + $0x4e8] sm:$0xff]  ;;  %v3657_v60 = vld [vmem:[%s6452_s3 + $0x4e0] sm:$0xff]  ;;  %v2883_v43 = vld [vmem:[%s6454_s5 + $0x10] sm:$0xff] }
 0x29f   : > { %3964 = vmatpush1.bf16.msra.mxu1 %v3963_v17  ;;  %2326 = vmatprep.mubr.f32.mxu1 %v6476_v40  ;;  %v3626_v17 = vld [vmem:[%s6452_s3 + $0x3e8] sm:$0xff]  ;;  %v2881_v51 = vld [vmem:[%s6454_s5] sm:$0xff] }
 0x2a0   : > { %3966 = vmatprep.subr.bf16.mxu1 %v3965_v31  ;;  %v3628_v31 = vld [vmem:[%s6452_s3 + $0x3f8] sm:$0xff]  ;;  %v2885_v55 = vld [vmem:[%s6454_s5 + $0x20] sm:$0xff]  ;;  %v2906_v16 = vld [vmem:[%s6454_s5 + $0xc8] sm:$0xff] }
 0x2a1   : > { %v4001_v21 = vpack.c.bf16 %v3628_v31, %v3626_v17  ;;  %v3659_v17 = vld [vmem:[%s6452_s3 + $0x4f0] sm:$0xff]  ;;  %v2897_v31 = vld [vmem:[%s6454_s5 + $0x80] sm:$0xff] }
 0x2a2   : > { %2327 = vmatmul.mubr.f32.gmra.mrb[60].mxu1 %v5664_v42  ;;  %v2905_v41 = vld [vmem:[%s6454_s5 + $0xc0] sm:$0xff] }
 0x2a3   : > { %3968 = vmatpush1.bf16.msra.mxu1 %v3967_v22  ;;  %2332 = vmatprep.mubr.f32.mxu1 %v6476_v40  ;;  %v3630_v22 = vld [vmem:[%s6452_s3 + $0x408] sm:$0xff] }
 0x2a4   : > { %3970 = vmatprep.subr.bf16.mxu1 %v3969_v32  ;;  %v3632_v32 = vld [vmem:[%s6452_s3 + $0x418] sm:$0xff] }
 0x2a5   : > { %v4005_v50 = vpack.c.bf16 %v3632_v32, %v3630_v22  ;;  %v2882_v22 = vld [vmem:[%s6454_s5 + $0x8] sm:$0xff]  ;;  %v2899_v32 = vld [vmem:[%s6454_s5 + $0x90] sm:$0xff] }
 0x2a6   : > { %2333 = vmatmul.mubr.f32.gmra.mrb[62].mxu1 %v5676_v57 }
 0x2a7   : > { %3972 = vmatpush1.bf16.msra.mxu1 %v3971_v33  ;;  %2436 = vmatprep.mubr.f32.mxu1 %v6476_v40  ;;  %v3634_v33 = vld [vmem:[%s6452_s3 + $0x428] sm:$0xff] }
 0x2a8   : > { %3974 = vmatprep.subr.bf16.mxu1 %v3973_v25  ;;  %v3636_v25 = vld [vmem:[%s6452_s3 + $0x438] sm:$0xff] }
 0x2a9   : > { %v4009_v47 = vpack.c.bf16 %v3636_v25, %v3634_v33  ;;  %v2884_v33 = vld [vmem:[%s6454_s5 + $0x18] sm:$0xff]  ;;  %v2901_v25 = vld [vmem:[%s6454_s5 + $0xa0] sm:$0xff] }
 0x2aa   : > { %2437 = vmatmul.mubr.f32.vlgmr.msra.gmra.mrb[48].mxu1 %v5558_v52  ;;  %v3612_v52 = vld [vmem:[%s6452_s3 + $0x378] sm:$0xff] }
 0x2ab   : > { %3976 = vmatpush1.bf16.msra.mxu1 %v3975_v34  ;;  %2442 = vmatprep.mubr.f32.mxu1 %v6476_v40  ;;  %v3985_v48 = vpack.c.bf16 %v3612_v52, %v3610_v59  ;;  %v3638_v34 = vld [vmem:[%s6452_s3 + $0x448] sm:$0xff]  ;;  %v3643_v59 = vld [vmem:[%s6452_s3 + $0x470] sm:$0xff] }
 0x2ac   : > { %3978 = vmatprep.subr.bf16.mxu1 %v3977_v26  ;;  %v3640_v26 = vld [vmem:[%s6452_s3 + $0x458] sm:$0xff]  ;;  %v3646_v52 = vld [vmem:[%s6452_s3 + $0x488] sm:$0xff] }
 0x2ad   : > { %v4013_v8 = vpack.c.bf16 %v3640_v26, %v3638_v34  ;;  %v2886_v34 = vld [vmem:[%s6454_s5 + $0x28] sm:$0xff]  ;;  %v2889_v26 = vld [vmem:[%s6454_s5 + $0x40] sm:$0xff] }
 0x2ae   : > { %2443 = vmatmul.mubr.f32.gmra.mrb[50].mxu1 %v5592_v15 }
 0x2af   : > { %3980 = vmatpush1.bf16.msra.mxu1 %v3979_v2  ;;  %2448 = vmatprep.mubr.f32.mxu1 %v6476_v40  ;;  %v3642_v2 = vld [vmem:[%s6452_s3 + $0x468] sm:$0xff] }
 0x2b0   : > { %3982 = vmatprep.subr.bf16.mxu1 %v3981_v13  ;;  %v4015_v13 = vpack.c.bf16 %v3639_v45, %v3637_v12  ;;  %v2907_v12 = vld [vmem:[%s6454_s5 + $0xd0] sm:$0xff]  ;;  %v2908_v45 = vld [vmem:[%s6454_s5 + $0xd8] sm:$0xff] }
 0x2b2   : > { %2449 = vmatmul.mubr.f32.gmra.mrb[52].mxu1 %v5628_v62 }
 0x2b3   : > { %3984 = vmatpush1.bf16.msra.mxu1 %v3983_v4  ;;  %2454 = vmatprep.mubr.f32.mxu1 %v6476_v40  ;;  %v3648_v4 = vld [vmem:[%s6452_s3 + $0x498] sm:$0xff] }
 0x2b4   : > { %3986 = vmatprep.subr.bf16.mxu1 %v3985_v48  ;;  %v4019_v48 = vpack.c.bf16 %v3643_v59, %v3641_v3  ;;  %v4021_v5 = vpack.c.bf16 %v3648_v4, %v3646_v52  ;;  %v2909_v3 = vld [vmem:[%s6454_s5 + $0xe0] sm:$0xff]  ;;  %v2910_v59 = vld [vmem:[%s6454_s5 + $0xe8] sm:$0xff] }
 0x2b5   : > { %v4061_v52 = vpack.c.bf16 %v2910_v59, %v2909_v3  ;;  %v2893_v4 = vld [vmem:[%s6454_s5 + $0x60] sm:$0xff]  ;;  %v2915_v59 = vld [vmem:[%s6454_s5 + $0x110] sm:$0xff] }
 0x2b6   : > { %2455 = vmatmul.mubr.f32.gmra.mrb[54].mxu1 %v5652_v20 }
 0x2b7   : > { %3988 = vmatpush1.bf16.msra.mxu1 %v3987_v24  ;;  %2460 = vmatprep.mubr.f32.mxu1 %v6476_v40  ;;  %v3652_v24 = vld [vmem:[%s6452_s3 + $0x4b8] sm:$0xff] }
 0x2b8   : > { %3990 = vmatprep.subr.bf16.mxu1 %v3989_v28  ;;  %v4023_v28 = vpack.c.bf16 %v3647_v0, %v3645_v27  ;;  %v4025_v44 = vpack.c.bf16 %v3652_v24, %v3650_v23  ;;  %v2911_v27 = vld [vmem:[%s6454_s5 + $0xf0] sm:$0xff]  ;;  %v2912_v0 = vld [vmem:[%s6454_s5 + $0xf8] sm:$0xff] }
 0x2b9   : > { %v4065_v23 = vpack.c.bf16 %v2912_v0, %v2911_v27  ;;  %v2895_v24 = vld [vmem:[%s6454_s5 + $0x70] sm:$0xff] }
 0x2ba   : > { %2461 = vmatmul.mubr.f32.gmra.mrb[56].mxu1 %v5664_v42 }
 0x2bb   : > { %3992 = vmatpush1.bf16.msra.mxu1 %v3991_v39  ;;  %2466 = vmatprep.mubr.f32.mxu1 %v6476_v40  ;;  %v3656_v39 = vld [vmem:[%s6452_s3 + $0x4d8] sm:$0xff] }
 0x2bc   : > { %3994 = vmatprep.subr.bf16.mxu1 %v3993_v37  ;;  %v4027_v37 = vpack.c.bf16 %v3651_v35, %v3649_v53  ;;  %v4029_v9 = vpack.c.bf16 %v3656_v39, %v3654_v29  ;;  %v2929_v53 = vld [vmem:[%s6454_s5 + $0x180] sm:$0xff]  ;;  %v2930_v35 = vld [vmem:[%s6454_s5 + $0x188] sm:$0xff] }
 0x2bd   : > { %v4069_v29 = vpack.c.bf16 %v2930_v35, %v2929_v53  ;;  %v2825_v39 = vld [vmem:[%s6453_s4] sm:$0x3] }
 0x2be   : > { %2467 = vmatmul.mubr.f32.gmra.mrb[58].mxu1 %v5676_v57 }
 0x2bf   : > { %3996 = vmatpush1.bf16.msra.mxu1 %v3995_v56  ;;  %2472 = vmatprep.mubr.f32.mxu1 %v6476_v40  ;;  %v3660_v56 = vld [vmem:[%s6452_s3 + $0x4f8] sm:$0xff] }
 0x2c0   : > { %3998 = vmatprep.subr.bf16.mxu1 %v3997_v49  ;;  %v4031_v49 = vpack.c.bf16 %v3655_v46, %v3653_v30  ;;  %v4033_v7 = vpack.c.bf16 %v3660_v56, %v3658_v6 }
 0x2c2   : > { %2473 = vmatmul.mubr.f32.gmra.mrb[60].mxu1 %v5688_v18 }
 0x2c3   : > { %4000 = vmatpush1.bf16.msra.mxu1 %v3999_v38  ;;  %2478 = vmatprep.mubr.f32.mxu1 %v6476_v40  ;;  %v2898_v38 = vld [vmem:[%s6454_s5 + $0x88] sm:$0xff] }
 0x2c4   : > { %4002 = vmatprep.subr.bf16.mxu1 %v4001_v21  ;;  %v4035_v21 = vpack.c.bf16 %v3659_v17, %v3657_v60  ;;  %v4037_v63 = vpack.c.bf16 %v2898_v38, %v2897_v31 }
 0x2c6   : > { %2479 = vmatmul.mubr.f32.gmra.mrb[62].mxu1 %v5736_v10 }
 0x2c7   : > { %4004 = vmatpush1.bf16.msra.mxu1 %v4003_v11  ;;  %2598 = vmatprep.mubr.f32.mxu1 %v6476_v40  ;;  %v2900_v11 = vld [vmem:[%s6454_s5 + $0x98] sm:$0xff] }
 0x2c8   : > { %4006 = vmatprep.subr.bf16.mxu1 %v4005_v50  ;;  %v4039_v50 = vpack.c.bf16 %v2882_v22, %v2881_v51  ;;  %v4041_v61 = vpack.c.bf16 %v2900_v11, %v2899_v32 }
 0x2ca   : > { %2599 = vmatmul.mubr.f32.vlgmr.msra.gmra.mrb[48].mxu1 %v5592_v15  ;;  %v3644_v15 = vld [vmem:[%s6452_s3 + $0x478] sm:$0xff] }
 0x2cb   : > { %4008 = vmatpush1.bf16.msra.mxu1 %v4007_v54  ;;  %2604 = vmatprep.mubr.f32.mxu1 %v6476_v40  ;;  %v4017_v19 = vpack.c.bf16 %v3644_v15, %v3642_v2  ;;  %v2902_v54 = vld [vmem:[%s6454_s5 + $0xa8] sm:$0xff]  ;;  %v4057_v2 = vpack.c.bf16 %v2908_v45, %v2907_v12  ;;  %v2891_v15 = vld [vmem:[%s6454_s5 + $0x50] sm:$0xff] }
 0x2cc   : > { %4010 = vmatprep.subr.bf16.mxu1 %v4009_v47  ;;  %v4043_v47 = vpack.c.bf16 %v2884_v33, %v2883_v43  ;;  %v4045_v1 = vpack.c.bf16 %v2902_v54, %v2901_v25 }
 0x2ce   : > { %2605 = vmatmul.mubr.f32.gmra.mrb[50].mxu1 %v5628_v62 }
 0x2cf   : > { %4012 = vmatpush1.bf16.msra.mxu1 %v4011_v58  ;;  %2610 = vmatprep.mubr.f32.mxu1 %v6476_v40  ;;  %v2890_v58 = vld [vmem:[%s6454_s5 + $0x48] sm:$0xff] }
 0x2d0   : > { %4014 = vmatprep.subr.bf16.mxu1 %v4013_v8  ;;  %v4055_v8 = vpack.c.bf16 %v2890_v58, %v2889_v26  ;;  %v2931_v26 = vld [vmem:[%s6454_s5 + $0x190] sm:$0xff]  ;;  %v2932_v58 = vld [vmem:[%s6454_s5 + $0x198] sm:$0xff] }
 0x2d1   : > { %v4073_v3 = vpack.c.bf16 %v2932_v58, %v2931_v26  ;;  %v2925_v26 = vld [vmem:[%s6454_s5 + $0x160] sm:$0xff]  ;;  %v2926_v58 = vld [vmem:[%s6454_s5 + $0x168] sm:$0xff] }
 0x2d2   : > { %2611 = vmatmul.mubr.f32.gmra.mrb[52].mxu1 %v5652_v20 }
 0x2d3   : > { %4016 = vmatpush1.bf16.msra.mxu1 %v4015_v13  ;;  %2616 = vmatprep.mubr.f32.mxu1 %v6476_v40  ;;  %v2892_v13 = vld [vmem:[%s6454_s5 + $0x58] sm:$0xff] }
 0x2d4   : > { %4018 = vmatprep.subr.bf16.mxu1 %v4017_v19  ;;  %v4059_v19 = vpack.c.bf16 %v2892_v13, %v2891_v15 }
 0x2d6   : > { %2617 = vmatmul.mubr.f32.gmra.mrb[54].mxu1 %v5664_v42 }
 0x2d7   : > { %4020 = vmatpush1.bf16.msra.mxu1 %v4019_v48  ;;  %2622 = vmatprep.mubr.f32.mxu1 %v6476_v40  ;;  %v2894_v48 = vld [vmem:[%s6454_s5 + $0x68] sm:$0xff] }
 0x2d8   : > { %4022 = vmatprep.subr.bf16.mxu1 %v4021_v5  ;;  %v4063_v5 = vpack.c.bf16 %v2894_v48, %v2893_v4  ;;  %v2933_v48 = vld [vmem:[%s6454_s5 + $0x1a0] sm:$0xff] }
 0x2da   : > { %2623 = vmatmul.mubr.f32.gmra.mrb[56].mxu1 %v5676_v57 }
 0x2db   : > { %4024 = vmatpush1.bf16.msra.mxu1 %v4023_v28  ;;  %2628 = vmatprep.mubr.f32.mxu1 %v6476_v40  ;;  %v2896_v28 = vld [vmem:[%s6454_s5 + $0x78] sm:$0xff] }
 0x2dc   : > { %4026 = vmatprep.subr.bf16.mxu1 %v4025_v44  ;;  %v4067_v44 = vpack.c.bf16 %v2896_v28, %v2895_v24 }
 0x2de   : > { %2629 = vmatmul.mubr.f32.gmra.mrb[58].mxu1 %v5688_v18 }
 0x2df   : > { %4028 = vmatpush1.bf16.msra.mxu1 %v4027_v37  ;;  %2634 = vmatprep.mubr.f32.mxu1 %v6476_v40  ;;  %v6478_v37 = vld [vmem:[#allocation7_spill] sm:$0xff] }
 0x2e0   : > { %4030 = vmatprep.subr.bf16.mxu1 %v4029_v9  ;;  %v6479_v9 = vsub.s32 0, %v6478_v37  ;;  %v6480_v6 = vsub.s32 1, %v6478_v37  ;;  %v2918_v37 = vld [vmem:[%s6454_s5 + $0x128] sm:$0xff] }
 0x2e2   : > { %2635 = vmatmul.mubr.f32.gmra.mrb[60].mxu1 %v5736_v10  ;;  %v6178_v30 = vrot.slane %v2825_v39, %v6479_v9  ;;  %v6182_v56 = vrot.slane %v2825_v39, %v6480_v6  ;;  %v2917_v39 = vld [vmem:[%s6454_s5 + $0x120] sm:$0xff]  ;;  %v2936_v6 = vld [vmem:[%s6454_s5 + $0x1b8] sm:$0xff] }
 0x2e3   : > { %4032 = vmatpush1.bf16.msra.mxu1 %v4031_v49  ;;  %2640 = vmatprep.mubr.f32.mxu1 %v6476_v40 }
 0x2e4   : > { %4034 = vmatprep.subr.bf16.mxu1 %v4033_v7 }
 0x2e6   : > { %2641 = vmatmul.mubr.f32.gmra.mrb[62].mxu1 %v5774_v14 }
 0x2e7   : > { %4036 = vmatpush1.bf16.msra.mxu1 %v4035_v21  ;;  %2760 = vmatprep.mubr.f32.mxu1 %v6476_v40 }
 0x2e8   : > { %4038 = vmatprep.subr.bf16.mxu1 %v4037_v63 }
 0x2ea   : > { %2761 = vmatmul.mubr.f32.vlgmr.msra.gmra.mrb[48].mxu1 %v5628_v62  ;;  %v4047_v62 = vpack.c.bf16 %v2886_v34, %v2885_v55 }
 0x2eb   : > { %2766 = vmatprep.mubr.f32.mxu1 %v6476_v40  ;;  %4040 = vmatpush3.bf16.msra.mxu1 %v4039_v50 }
 0x2ec   : > { %4042 = vmatprep.subr.bf16.mxu1 %v4041_v61 }
 0x2ee   : > { %2767 = vmatmul.mubr.f32.gmra.mrb[50].mxu1 %v5652_v20  ;;  %v2903_v20 = vld [vmem:[%s6454_s5 + $0xb0] sm:$0xff] }
 0x2ef   : > { %2772 = vmatprep.mubr.f32.mxu1 %v6476_v40  ;;  %4044 = vmatpush3.bf16.msra.mxu1 %v4043_v47 }
 0x2f0   : > { %4046 = vmatprep.subr.bf16.mxu1 %v4045_v1 }
 0x2f2   : > { %2773 = vmatmul.mubr.f32.gmra.mrb[52].mxu1 %v5664_v42  ;;  %v2904_v42 = vld [vmem:[%s6454_s5 + $0xb8] sm:$0xff] }
 0x2f3   : > { %2778 = vmatprep.mubr.f32.mxu1 %v6476_v40  ;;  %4048 = vmatpush3.bf16.msra.mxu1 %v4047_v62 }
 0x2f6   : > { %2779 = vmatmul.mubr.f32.gmra.mrb[54].mxu1 %v5676_v57  ;;  %v4049_v57 = vpack.c.bf16 %v2904_v42, %v2903_v20 }
 0x2f7   : > { %2784 = vmatprep.mubr.f32.mxu1 %v6476_v40 }
 0x2f8   : > { %4050 = vmatprep.subr.bf16.mxu1 %v4049_v57 }
 0x2fa   : > { %2785 = vmatmul.mubr.f32.gmra.mrb[56].mxu1 %v5688_v18  ;;  %v2887_v18 = vld [vmem:[%s6454_s5 + $0x30] sm:$0xff] }
 0x2fb   : > { %2790 = vmatprep.mubr.f32.mxu1 %v6476_v40 }
 0x2fe   : > { %2791 = vmatmul.mubr.f32.gmra.mrb[58].mxu1 %v5736_v10  ;;  %v2888_v10 = vld [vmem:[%s6454_s5 + $0x38] sm:$0xff] }
 0x2ff   : > { %2796 = vmatprep.mubr.f32.mxu1 %v6476_v40 }
 0x302   : > { %2797 = vmatmul.mubr.f32.gmra.mrb[60].mxu1 %v5774_v14  ;;  %v4051_v14 = vpack.c.bf16 %v2888_v10, %v2887_v18 }
 0x303   : > { %2802 = vmatprep.mubr.f32.mxu1 %v6476_v40 }
 0x304   : > { %4052 = vmatpush3.bf16.msra.mxu1 %v4051_v14 }
 0x306   : > { %2803 = vmatmul.mubr.f32.gmra.mrb[62].mxu1 %v2047_v36  ;;  %v4053_v36 = vpack.c.bf16 %v2906_v16, %v2905_v41  ;;  %v2913_v41 = vld [vmem:[%s6454_s5 + $0x100] sm:$0xff]  ;;  %v2914_v16 = vld [vmem:[%s6454_s5 + $0x108] sm:$0xff] }
 0x307   : > { %v4071_v15 = vpack.c.bf16 %v2914_v16, %v2913_v41  ;;  %v2942_v41 = vld [vmem:[%s6454_s5 + $0x1e8] sm:$0xff] }
 0x308   : > { %4054 = vmatprep.subr.bf16.mxu1 %v4053_v36 }
 0x309   : > { %4056 = vmatpush3.bf16.msra.mxu1 %v4055_v8 }
 0x30a   : > { %4058 = vmatprep.subr.bf16.mxu1 %v4057_v2 }
 0x30d   : > { %4060 = vmatpush3.bf16.msra.mxu1 %v4059_v19 }
 0x30e   : > { %4062 = vmatprep.subr.bf16.mxu1 %v4061_v52  ;;  %v2916_v52 = vld [vmem:[%s6454_s5 + $0x118] sm:$0xff] }
 0x311   : > { %4064 = vmatpush3.bf16.msra.mxu1 %v4063_v5  ;;  %v2934_v5 = vld [vmem:[%s6454_s5 + $0x1a8] sm:$0xff] }
 0x312   : > { %4066 = vmatprep.subr.bf16.mxu1 %v4065_v23 }
 0x315   : > { %4068 = vmatpush3.bf16.msra.mxu1 %v4067_v44  ;;  %v4075_v44 = vpack.c.bf16 %v2916_v52, %v2915_v59  ;;  %v3094_v59 = vld [vmem:[%s6456_s7 + $0x8] sm:$0xff]  ;;  %v3095_v52 = vld [vmem:[%s6456_s7 + $0x10] sm:$0xff] }
 0x316   : > { %4070 = vmatprep.subr.bf16.mxu1 %v4069_v29  ;;  %v4077_v29 = vpack.c.bf16 %v2934_v5, %v2933_v48  ;;  %v3096_v5 = vld [vmem:[%s6456_s7 + $0x18] sm:$0xff] }
 0x3bd   : > { %v2762_v46 = vpop.f32.mrb[48].mxu1 }
 0x3be   : > { %v2764_v49 = vpop.f32.mrb[49].mxu1  ;;  %v2837_v7 = vadd.f32 %v6178_v30, %v2762_v46  ;;  %v2935_v46 = vld [vmem:[%s6454_s5 + $0x1b0] sm:$0xff] }
 0x3bf   : > { %v2838_v60 = vadd.f32 %v6182_v56, %v2764_v49 }
 0x3c0   : > { %v2853_v63 = vmax.f32 %v2837_v7, 0.0 }
 0x3c1   : > { %v2768_v17 = vpop.f32.mrb[50].mxu1  ;;  %v2854_v22 = vmax.f32 %v2838_v60, 0.0 }
 0x3c2   : > { %v2839_v31 = vadd.f32 %v6178_v30, %v2768_v17  ;;  %v2770_v38 = vpop.f32.mrb[51].mxu1 }
 0x3c3   : > { %v2840_v21 = vadd.f32 %v6182_v56, %v2770_v38 }
 0x3c4   : > { %v2855_v51 = vmax.f32 %v2839_v31, 0.0  ;;  %v4079_v31 = vpack.c.bf16 %v2918_v37, %v2917_v39  ;;  %v3103_v37 = vld [vmem:[%s6456_s7 + $0x50] sm:$0xff] }
 0x3c5   : > { %v2856_v32 = vmax.f32 %v2840_v21, 0.0  ;;  %v2774_v11 = vpop.f32.mrb[52].mxu1 }
 0x3c6   : > { %v2869_v50 = vmax.f32 %v2853_v63, %v2855_v51  ;;  %v2776_v61 = vpop.f32.mrb[53].mxu1  ;;  %v2841_v33 = vadd.f32 %v6178_v30, %v2774_v11  ;;  %v4081_v63 = vpack.c.bf16 %v2936_v6, %v2935_v46  ;;  %v2919_v51 = vld [vmem:[%s6454_s5 + $0x130] sm:$0xff]  ;;  %v2937_v11 = vld [vmem:[%s6454_s5 + $0x1c0] sm:$0xff] }
 0x3c7   : > { %v2870_v43 = vmax.f32 %v2854_v22, %v2856_v32  ;;  %v2842_v54 = vadd.f32 %v6182_v56, %v2776_v61  ;;  %v2920_v22 = vld [vmem:[%s6454_s5 + $0x138] sm:$0xff]  ;;  %v3105_v6 = vld [vmem:[%s6456_s7 + $0x60] sm:$0xff] }
 0x3c8   : > { %v2857_v62 = vmax.f32 %v2841_v33, 0.0 }
 0x3c9   : > { %v2877_v25 = vmax.f32 %v2869_v50, %v2870_v43  ;;  %v2780_v47 = vpop.f32.mrb[54].mxu1  ;;  %v2858_v42 = vmax.f32 %v2842_v54, 0.0 }
 0x3ca   : > { %v2843_v1 = vadd.f32 %v6178_v30, %v2780_v47  ;;  %v2782_v55 = vpop.f32.mrb[55].mxu1 }
 0x3cb   : > { %v2844_v34 = vadd.f32 %v6182_v56, %v2782_v55 }
 0x3cc   : > { %v2859_v20 = vmax.f32 %v2843_v1, 0.0  ;;  %v2922_v1 = vld [vmem:[%s6454_s5 + $0x148] sm:$0xff] }
 0x3cd   : > { %v2860_v57 = vmax.f32 %v2844_v34, 0.0  ;;  %v2786_v18 = vpop.f32.mrb[56].mxu1  ;;  %v2939_v34 = vld [vmem:[%s6454_s5 + $0x1d0] sm:$0xff] }
 0x3ce   : > { %v2871_v10 = vmax.f32 %v2857_v62, %v2859_v20  ;;  %v2788_v14 = vpop.f32.mrb[57].mxu1  ;;  %v2845_v8 = vadd.f32 %v6178_v30, %v2786_v18  ;;  %v2940_v62 = vld [vmem:[%s6454_s5 + $0x1d8] sm:$0xff]  ;;  %v2923_v18 = vld [vmem:[%s6454_s5 + $0x150] sm:$0xff] }
 0x3cf   : > { %v2872_v36 = vmax.f32 %v2858_v42, %v2860_v57  ;;  %v2846_v12 = vadd.f32 %v6182_v56, %v2788_v14  ;;  %v4089_v57 = vpack.c.bf16 %v2940_v62, %v2939_v34  ;;  %v2941_v14 = vld [vmem:[%s6454_s5 + $0x1e0] sm:$0xff]  ;;  %v3197_v34 = vld [vmem:[%s6458_s9 + $0x38] sm:$0xff] }
 0x3d0   : > { %v2861_v27 = vmax.f32 %v2845_v8, 0.0  ;;  %v2943_v8 = vld [vmem:[%s6454_s5 + $0x1f0] sm:$0xff] }
 0x3d1   : > { %v2792_v45 = vpop.f32.mrb[58].mxu1  ;;  %v2878_v2 = vmax.f32 %v2871_v10, %v2872_v36  ;;  %v2862_v23 = vmax.f32 %v2846_v12, 0.0  ;;  %v2924_v10 = vld [vmem:[%s6454_s5 + $0x158] sm:$0xff]  ;;  %v4093_v36 = vpack.c.bf16 %v2942_v41, %v2941_v14 }
 0x3d2   : > { %v2847_v13 = vadd.f32 %v6178_v30, %v2792_v45  ;;  %v2794_v19 = vpop.f32.mrb[59].mxu1  ;;  %v4091_v16 = vpack.c.bf16 %v2924_v10, %v2923_v18  ;;  %v2944_v12 = vld [vmem:[%s6454_s5 + $0x1f8] sm:$0xff]  ;;  %v4095_v45 = vpack.c.bf16 %v2926_v58, %v2925_v26  ;;  %v3200_v18 = vld [vmem:[%s6458_s9 + $0x50] sm:$0xf]  ;;  %v3662_v10 = vld [vmem:[%s6457_s8] ss:$0 sm:$0xff] }
 0x3d3   : > { %v2848_v4 = vadd.f32 %v6182_v56, %v2794_v19  ;;  %3016 = vmatprep.mubr.f32.mxu1 %v2878_v2  ;;  %v4097_v2 = vpack.c.bf16 %v2944_v12, %v2943_v8 }
 0x3d4   : > { %v2863_v0 = vmax.f32 %v2847_v13, 0.0  ;;  %3017 = vmatmul.mubr.f32.vlgmr.msra.gmra.mrb[64].mxu1 %v2877_v25  ;;  %v4083_v25 = vpack.c.bf16 %v2920_v22, %v2919_v51  ;;  %v2928_v13 = vld [vmem:[%s6454_s5 + $0x178] sm:$0xff] }
 0x3d5   : > { %v2864_v24 = vmax.f32 %v2848_v4, 0.0  ;;  %4072 = vmatpush3.bf16.msra.mxu1 %v4071_v15  ;;  %v2798_v28 = vpop.f32.mrb[60].mxu1  ;;  %v2927_v15 = vld [vmem:[%s6454_s5 + $0x170] sm:$0xff]  ;;  %v4504_v4 = vmov 0.0|0.0  }
 0x3d6   : > { %v6220_v53 = vmax.f32 %v2861_v27, %v2863_v0  ;;  %v2800_v35 = vpop.f32.mrb[61].mxu1  ;;  %4074 = vmatprep.subr.bf16.mxu1 %v4073_v3  ;;  %v2849_v49 = vadd.f32 %v6178_v30, %v2798_v28  ;;  %v4099_v19 = vpack.c.bf16 %v2928_v13, %v2927_v15  ;;  %v3093_v3 = vld [vmem:[%s6456_s7] sm:$0xff]  ;;  %v4105_v27 = vpack.c.bf16 %v3096_v5, %v3095_v52  ;;  %v3099_v28 = vld [vmem:[%s6456_s7 + $0x30] sm:$0xff] }
 0x3d7   : > { %v2874_v9 = vmax.f32 %v2862_v23, %v2864_v24  ;;  %v2850_v60 = vadd.f32 %v6182_v56, %v2800_v35  ;;  %v4102_v48 = vpack.c.bf16 %v3094_v59, %v3093_v3  ;;  %v3097_v0 = vld [vmem:[%s6456_s7 + $0x20] sm:$0xff]  ;;  %v3098_v23 = vld [vmem:[%s6456_s7 + $0x28] sm:$0xff] }
 0x3d8   : > { %v2865_v50 = vmax.f32 %v2849_v49, 0.0  ;;  %v4108_v24 = vpack.c.bf16 %v3098_v23, %v3097_v0  ;;  %v3101_v35 = vld [vmem:[%s6456_s7 + $0x40] sm:$0xff]  ;;  %v3106_v49 = vld [vmem:[%s6456_s7 + $0x68] sm:$0xff] }
 0x3d9   : > { %v2879_v7 = vmax.f32 %v6220_v53, %v2874_v9  ;;  %4076 = vmatpush3.bf16.msra.mxu1 %v4075_v44  ;;  %v2804_v17 = vpop.f32.mrb[62].mxu1  ;;  %v2866_v43 = vmax.f32 %v2850_v60, 0.0  ;;  %v3100_v44 = vld [vmem:[%s6456_s7 + $0x38] sm:$0xff]  ;;  %v3107_v60 = vld [vmem:[%s6456_s7 + $0x70] sm:$0xff] }
 0x3da   : > { %v2851_v38 = vadd.f32 %v6178_v30, %v2804_v17  ;;  %v2806_v21 = vpop.f32.mrb[63].mxu1  ;;  %4078 = vmatprep.subr.bf16.mxu1 %v4077_v29  ;;  %v2938_v30 = vld [vmem:[%s6454_s5 + $0x1c8] sm:$0xff]  ;;  %v4111_v53 = vpack.c.bf16 %v3100_v44, %v3099_v28  ;;  %v3104_v9 = vld [vmem:[%s6456_s7 + $0x58] sm:$0xff] }
 0x3db   : > { %v2852_v32 = vadd.f32 %v6182_v56, %v2806_v21  ;;  %v4085_v47 = vpack.c.bf16 %v2938_v30, %v2937_v11  ;;  %v2921_v56 = vld [vmem:[%s6454_s5 + $0x140] sm:$0xff]  ;;  %v3102_v29 = vld [vmem:[%s6456_s7 + $0x48] sm:$0xff]  ;;  %v4117_v46 = vpack.c.bf16 %v3104_v9, %v3103_v37 }
 0x3dc   : > { %v2867_v61 = vmax.f32 %v2851_v38, 0.0  ;;  %v4087_v42 = vpack.c.bf16 %v2922_v1, %v2921_v56  ;;  %v4114_v39 = vpack.c.bf16 %v3102_v29, %v3101_v35  ;;  %v3661_v21 = vld [vmem:[%s6455_s6] ss:$0 sm:$0xff]  ;;  %v3191_v30 = vld [vmem:[%s6458_s9 + $0x8] sm:$0xff] }
 0x3dd   : > { %v2868_v33 = vmax.f32 %v2852_v32, 0.0  ;;  %4080 = vmatpush3.bf16.msra.mxu1 %v4079_v31  ;;  %v3190_v11 = vld [vmem:[%s6458_s9] sm:$0xff]  ;;  %v3195_v56 = vld [vmem:[%s6458_s9 + $0x28] sm:$0xff] }
 0x3de   : > { %v2875_v54 = vmax.f32 %v2865_v50, %v2867_v61  ;;  %4082 = vmatprep.subr.bf16.mxu1 %v4081_v63  ;;  %v4123_v61 = vpack.c.bf16 %v3191_v30, %v3190_v11 }
 0x3df   : > { %v2876_v55 = vmax.f32 %v2866_v43, %v2868_v33  ;;  %v3192_v33 = vld [vmem:[%s6458_s9 + $0x10] sm:$0xff] }
 0x3e1   : > { %4084 = vmatpush3.bf16.msra.mxu1 %v4083_v25  ;;  %v2880_v20 = vmax.f32 %v2875_v54, %v2876_v55  ;;  %v3193_v25 = vld [vmem:[%s6458_s9 + $0x18] sm:$0xff]  ;;  %v3196_v55 = vld [vmem:[%s6458_s9 + $0x30] sm:$0xff] }
 0x3e2   : > { %4086 = vmatprep.subr.bf16.mxu1 %v4085_v47  ;;  %v4126_v54 = vpack.c.bf16 %v3193_v25, %v3192_v33  ;;  %v3194_v47 = vld [vmem:[%s6458_s9 + $0x20] sm:$0xff]  ;;  %v4132_v62 = vpack.c.bf16 %v3197_v34, %v3196_v55 }
 0x3e3   : > { %3086 = vmatprep.mubr.f32.mxu1 %v2880_v20  ;;  %v4129_v1 = vpack.c.bf16 %v3195_v56, %v3194_v47  ;;  %v3198_v20 = vld [vmem:[%s6458_s9 + $0x40] sm:$0xff] }
 0x3e5   : > { %4088 = vmatpush3.bf16.msra.mxu1 %v4087_v42  ;;  %v3199_v42 = vld [vmem:[%s6458_s9 + $0x48] sm:$0xff] }
 0x3e6   : > { %4090 = vmatprep.subr.bf16.mxu1 %v4089_v57  ;;  %v4135_v57 = vpack.c.bf16 %v3199_v42, %v3198_v20 }
 0x3e9   : > { %4092 = vmatpush3.bf16.msra.mxu1 %v4091_v16 }
 0x3ea   : > { %4094 = vmatprep.subr.bf16.mxu1 %v4093_v36 }
 0x3ed   : > { %4096 = vmatpush3.bf16.msra.mxu1 %v4095_v45 }
 0x3ee   : > { %4098 = vmatprep.subr.bf16.mxu1 %v4097_v2 }
 0x3f1   : > { %4100 = vmatpush3.bf16.msra.mxu1 %v4099_v19 }
 0x3f2   : > { %4101 = vmatprep.subr.bf16.mxu1 %v4504_v4 }
 0x3f4   : > { %3087 = vmatmul.mubr.f32.vlgmr.msra.gmra.mrb[66].mxu1 %v2879_v7  ;;  %v4120_v7 = vpack.c.bf16 %v3106_v49, %v3105_v6 }
 0x3f5   : > { %4103 = vmatpush3.bf16.msra.mxu1 %v4102_v48  ;;  %3799 = vmatprep.mubr.msk.f32.mxu1 %vm4505_vm4, %v6476_v40 }
 0x3f6   : > { %4104 = vmatprep.subr.bf16.mxu1 %v4504_v4 }
 0x3f9   : > { %4106 = vmatpush3.bf16.msra.mxu1 %v4105_v27 }
 0x3fa   : > { %4107 = vmatprep.subr.bf16.mxu1 %v4504_v4 }
 0x3fd   : > { %4109 = vmatpush3.bf16.msra.mxu1 %v4108_v24 }
 0x3fe   : > { %4110 = vmatprep.subr.bf16.mxu1 %v4504_v4 }
 0x401   : > { %4112 = vmatpush3.bf16.msra.mxu1 %v4111_v53 }
 0x402   : > { %4113 = vmatprep.subr.bf16.mxu1 %v4504_v4 }
 0x405   : > { %4115 = vmatpush3.bf16.msra.mxu1 %v4114_v39 }
 0x406   : > { %4116 = vmatprep.subr.bf16.mxu1 %v4504_v4 }
 0x409   : > { %4118 = vmatpush3.bf16.msra.mxu1 %v4117_v46 }
 0x40a   : > { %4119 = vmatprep.subr.bf16.mxu1 %v4504_v4 }
 0x40d   : > { %4121 = vmatpush3.bf16.msra.mxu1 %v4120_v7 }
 0x40e   : > { %3797 = vmatprep.subr.mxu1 %v6476_v40 }
 0x411   : > { %3798 = vmatpush3.msra.mxu1 %v3107_v60 }
 0x412   : > { %4122 = vmatprep.subr.bf16.mxu1 %v4504_v4 }
 0x4a7   : > { %v3703_v17 = vpop.f32.mrb[64].mxu1 }
 0x4a8   : > { %v3704_v31 = vpop.f32.mrb[65].mxu1 }
 0x4a9   : > { %v3705_v38 = vadd.f32 %v3704_v31, %v3703_v17 }
 0x4ab   : > { %v3019_v22 = vadd.f32 %v3705_v38, %v3661_v21 }
 0x4c7   : > { %v3738_v63 = vpop.f32.mrb[66].mxu1 }
 0x4c8   : > { %v3739_v51 = vpop.f32.mrb[67].mxu1 }
 0x4c9   : > { %v3740_v32 = vadd.f32 %v3739_v51, %v3738_v63 }
 0x4cb   : > { %v3089_v50 = vadd.f32 %v3740_v32, %v3019_v22 }
 0x4cd   : > { %v3092_v43 = vmax.f32 %v3089_v50, 0.0 }
 0x4cf   : > { %3800 = vmatmul.mubr.msk.f32.vlgmr.msra.gmra.mrb[68].mxu1 %vm3115_vm5, %v3092_v43 }
 0x4d0   : > { %4124 = vmatpush3.bf16.msra.mxu1 %v4123_v61  ;;  %3824 = vmatprep.mubr.msk.f32.mxu1 %vm4505_vm4, %v6476_v40 }
 0x4d1   : > { %4125 = vmatprep.subr.bf16.mxu1 %v4504_v4 }
 0x4d4   : > { %4127 = vmatpush3.bf16.msra.mxu1 %v4126_v54 }
 0x4d5   : > { %4128 = vmatprep.subr.bf16.mxu1 %v4504_v4 }
 0x4d8   : > { %4130 = vmatpush3.bf16.msra.mxu1 %v4129_v1 }
 0x4d9   : > { %4131 = vmatprep.subr.bf16.mxu1 %v4504_v4 }
 0x4dc   : > { %4133 = vmatpush3.bf16.msra.mxu1 %v4132_v62 }
 0x4dd   : > { %4134 = vmatprep.subr.bf16.mxu1 %v4504_v4 }
 0x4e0   : > { %4136 = vmatpush3.bf16.msra.mxu1 %v4135_v57 }
 0x4e1   : > { %3822 = vmatprep.subr.mxu1 %v6476_v40  ;;  %v3664_v40 = vld [vmem:[%s6459_s10] ss:$0 sm:$0xff] }
 0x4e4   : > { %3823 = vmatpush3.msk.msra.mxu1 %vm645_vm0, %v3200_v18 }
 0x5a2   : > { %v3185_v14 = vpop.f32.mrb[68].mxu1 }
 0x5a3   : > { %v3186_v41 = vadd.f32 %v3662_v10, %v3185_v14  ;;  %v3801_v16 = vpop.f32.mrb[69].mxu1 }
 0x5a5   : > { %v3189_v36 = vmax.f32 %v3186_v41, 0.0 }
 0x5a7   : > { %3825 = vmatmul.mubr.msk.f32.vlgmr.msra.gmra.mrb[70].mxu1 %vm3208_vm6, %v3189_v36 }
 0x67a   : > { %v3281_v26 = vpop.f32.mrb[70].mxu1 }
 0x67b   : > { %v3282_v58 = vadd.f32 %v3664_v40, %v3281_v26  ;;  %v3826_v8 = vpop.f32.mrb[71].mxu1 }
 0x67d   : > { %3285 = vst [vmem:[%s526_s0] sm:$0xff] %v3282_v58 }
 0x67e   : > { %4451 = shalt.err (!%p4448_p5)
}
 0x67f   : > { %s4452_s25 = scalar_lea.hbm %s6405_s30, 128  ;;  %s4456_s24 = scalar_lea.hbm %s6460_s11, 256 }
 0x680   : > { %p4453_p7 = scmp.ne.s32.totalorder %s6405_s30, %s4452_s25  ;;  %p4457_p12 = scmp.lt.u32.totalorder %s6405_s30, %s6460_s11 }
 0x681   : > { %p4458_p13 = scmp.lt.u32.totalorder %s4456_s24, %s4452_s25  ;;  %p4460_p1 = scmp.lt.u32.totalorder %s4452_s25, %s6405_s30 }
 0x682   : > { %p4454_p10 = pnand %p4453_p7, %p4605_p6 }
 0x683   : > { %p4459_p0 = por %p4458_p13, %p4457_p12 }
 0x684   : > { %p4455_p11 = pneg %p4454_p10 }
 0x685   : > { %p4461_p2 = por %p4460_p1, %p4459_p0 }
 0x687   : > { %p4462_p3 = pnand %p4461_p2, %p4455_p11 }
 0x689   : > { %4465 = shalt.err (!%p4462_p3)
}
 0x68a   : > { %4395 = dma.vmem_to_hbm [thread:$0]  (%p4605_p6), %s6407_s21, 128, %s6405_s30, %s3287_s12  }
 0x68b PF: > { %s3312_s14 = sand.u32 1, %s4488_s17   ;;  %p4398_p4 = pnand %p3367_p9, %p4609_p8 }
 0x68c   : > { %s3313_s15 = scalar_lea.sflag [#allocation4], %s3312_s14 }
 0x68d   : > { %4483 = dma.done.wait (!%p4398_p4), %s3313_s15, 128  }
 0x68e   : > { %4485 = vsyncadd (!%p4398_p4), %s3313_s15, 4294967168  ;;  %p21_p5 = scmp.ge.s32.totalorder %s4590_s23, 4   ;;  %s6482_s17 = smov %s4492_s18 }
 0x68f   : > { %s6483_s18 = smov %s4496_s19  ;;  %s6484_s19 = smov %s4603_s26 }
 0x690   : > { %s6485_s20 = smov %s4590_s23  ;;  %23 = sbr.rel (!%p21_p5) target bundleno = 5 (0x5), region = 150 }
 0x697   :  { %3318 = vsyncpa [#allocation4], 1 }
 0x698   :  { %3320 = vsyncpa [#allocation4 + $0x1], 1 }

</bundles_post_ra>
